<compile_context>
chip_gen: v6e
topology: v6e:2x2x1
jax: 0.10.0
libtpu: 0.0.40
codegen_flags: <defaults>
</compile_context>

<pallas_src>
import functools

import jax
import jax.numpy as jnp
from jax import lax
from jax.experimental import pallas as pl
from jax.experimental.pallas import tpu as pltpu


def _spatial_attention_kernel(w_ref, x_ref, o_ref, sum_sc, max_sc, *,
                              kernel_size, H, W, C):
    """One (batch-block, channel-chunk) grid step.

    w_ref  : SMEM (2*K*K,) f32  conv taps: [0:KK] avg channel, [KK:2KK] max channel
    x_ref  : VMEM (Bt, Ct, HW)  input chunk (batch leading, channels on sublanes,
                                flat spatial on lanes)
    o_ref  : VMEM (Bt, 1, HW)   sigmoid(conv) output (written on the last chunk)
    sum_sc : VMEM (Bt, HW) f32  running channel sum  (carried across channel chunks)
    max_sc : VMEM (Bt, HW) f32  running channel max
    """
    K = kernel_size
    KK = K * K
    pad = (K - 1) // 2
    HW = H * W

    c_idx = pl.program_id(1)
    num_c = pl.num_programs(1)

    # ---------------- channel reduction (every chunk) ----------------
    @pl.when(c_idx == 0)
    def _init():
        sum_sc[...] = jnp.zeros_like(sum_sc)
        max_sc[...] = jnp.full(max_sc.shape, -jnp.inf, dtype=max_sc.dtype)

    xb = x_ref[...]                                            # (Bt, Ct, HW)
    # f32 accumulation on the current chunk only; the cross-sublane (channel)
    # reduce lowers to the XLU, which is otherwise idle during this phase.
    sum_sc[...] += jnp.sum(xb, axis=1, dtype=jnp.float32)
    max_sc[...] = jnp.maximum(max_sc[...], jnp.max(xb, axis=1).astype(jnp.float32))

    # ---------------- conv + sigmoid (last chunk only) ----------------
    @pl.when(c_idx == num_c - 1)
    def _finalize():
        avg = sum_sc[...] * jnp.float32(1.0 / C)               # (Bt, HW)
        mx = max_sc[...]                                       # (Bt, HW)

        # Hoist all 2*K*K scalar tap reads (SMEM slds) out of the vector loop.
        w_avg = [w_ref[t] for t in range(KK)]
        w_max = [w_ref[KK + t] for t in range(KK)]

        # Column-validity masks depend only on kw; build once, as f32
        # multiply-masks pre-broadcast to (Bt, HW) so each tap costs a single
        # vmul (JAX does not CSE broadcast_in_dim).  The center column is
        # trivially all-valid and gets no mask at all.
        lane = lax.broadcasted_iota(jnp.int32, avg.shape, 1)   # flattened spatial idx
        col = (lane & (W - 1)) if (W & (W - 1)) == 0 else (lane % W)
        col_mask = []
        for kw in range(K):
            dw = kw - pad
            lo, hi = max(0, -dw), min(W, W - dw)
            col_mask.append(None if (lo == 0 and hi == W)
                            else ((col >= lo) & (col < hi)).astype(jnp.float32))

        # K*K-tap "same" conv as static lane rolls (XLU slot) of the per-tap
        # weighted map (w_avg*avg + w_max*mx).  The row-validity mask is the
        # same for every kw in a row, so it is applied once per row after the
        # inner loop; row partials are folded into <=4 accumulator chains to
        # bound vreg pressure at larger H*W.
        num_chains = min(4, K)
        chains = [None] * num_chains
        for kh in range(K):
            dh = kh - pad
            row_acc = None
            for kw in range(K):
                dw = kw - pad
                t = kh * K + kw
                pre = w_avg[t] * avg + w_max[t] * mx
                shift = (-(dh * W + dw)) % HW                  # rolled[p] = pre[p + dh*W + dw]
                rolled = pltpu.roll(pre, shift, axis=1) if shift else pre
                tap = rolled if col_mask[kw] is None else rolled * col_mask[kw]
                row_acc = tap if row_acc is None else row_acc + tap
            r_lo, r_hi = max(0, -dh) * W, min(H, H - dh) * W
            if not (r_lo == 0 and r_hi == HW):                 # center row needs no mask
                row_acc = jnp.where((lane >= r_lo) & (lane < r_hi), row_acc, 0.0)
            c = kh % num_chains
            chains[c] = row_acc if chains[c] is None else chains[c] + row_acc

        # Balanced tree-sum of the accumulator chains.
        while len(chains) > 1:
            nxt = [chains[i] + chains[i + 1] for i in range(0, len(chains) - 1, 2)]
            if len(chains) % 2 == 1:
                nxt.append(chains[-1])
            chains = nxt

        o_ref[...] = jax.nn.sigmoid(chains[0])[:, None, :].astype(o_ref.dtype)


def _round_up(v, m):
    return (v + m - 1) // m * m


_SUBLANE_TILE = {4: 8, 2: 16, 1: 32}     # rows per sublane tile by itemsize


def _vmem_capacity_bytes():
    try:
        info = pltpu.get_tpu_info()
        cap = getattr(info, "vmem_capacity_bytes", None)
        if cap:
            return int(cap)
    except Exception:
        pass
    return 128 << 20                      # v5e / v6e default


def _choose_batch_block(B, C, hw, itemsize, sublane_tile, min_block_bytes=1 << 20):
    """Leading (un-tiled) batch axis: split for megacore + DMA sizing."""
    hw_pad = _round_up(hw, 128)
    per_batch = _round_up(C, sublane_tile) * hw_pad * itemsize
    bt = B
    # Take one split whenever possible so the 'parallel' grid axis has >= 2
    # steps (both v7x TensorCores get work; near-zero cost on v5e/v6e).
    if bt > 1 and bt % 2 == 0:
        bt //= 2
    # Keep splitting only while each per-step block stays comfortably large.
    while bt % 2 == 0 and (bt // 2) * per_batch >= min_block_bytes:
        bt //= 2
    return bt


def _choose_channel_block(C, batch_block, hw, itemsize, sublane_tile, budget_bytes):
    """Largest legal channel chunk whose *padded, double-buffered* input block
    stays under the VMEM budget."""
    hw_pad = _round_up(hw, 128)

    def block_bytes(ct):
        # x2: Pallas double-buffers the input block.
        return 2 * batch_block * _round_up(ct, sublane_tile) * hw_pad * itemsize

    legal = [d for d in range(1, C + 1)
             if C % d == 0 and (d % sublane_tile == 0 or d == C)]
    fitting = [d for d in legal if block_bytes(d) <= budget_bytes]
    return max(fitting) if fitting else min(legal)


def spatial_attention(x, conv_weight, kernel_size=7, *, batch_block=None,
                      channel_block=None, vmem_block_budget_bytes=None):
    """x: (B, C, H, W); conv_weight: (1, 2, K, K). Returns (B, 1, H, W)."""
    assert kernel_size in (3, 7), "kernel size must be 3 or 7"
    B, C, H, W = x.shape
    HW = H * W
    KK = kernel_size * kernel_size
    assert conv_weight.shape == (1, 2, kernel_size, kernel_size)

    itemsize = jnp.dtype(x.dtype).itemsize
    sublane_tile = _SUBLANE_TILE.get(itemsize, 8)

    # Generation-aware VMEM budgets: ~48 MiB limit on v7x (64 MiB/TC), ~96 MiB
    # on v5e/v6e (128 MiB); per-step input blocks target 12-24 MiB
    # (double-buffered, padded).
    vmem_phys = _vmem_capacity_bytes()
    vmem_limit = min(vmem_phys * 3 // 4, 96 << 20)
    if vmem_block_budget_bytes is None:
        vmem_block_budget_bytes = min(vmem_limit // 4, 24 << 20)

    if batch_block is None:
        batch_block = _choose_batch_block(B, C, HW, itemsize, sublane_tile)
    assert B % batch_block == 0

    if channel_block is None:
        channel_block = _choose_channel_block(C, batch_block, HW, itemsize,
                                              sublane_tile, vmem_block_budget_bytes)
    assert C % channel_block == 0
    assert channel_block == C or channel_block % sublane_tile == 0, (
        "channel block must be the full channel count or a multiple of the "
        f"sublane tile ({sublane_tile} for itemsize {itemsize})")

    grid = (B // batch_block, C // channel_block)

    # Free, contiguous relayouts only (no extra HBM pass): the kernel reads x
    # as (B, C, H*W) with channels on sublanes and flat spatial on lanes.
    x_l = x.reshape(B, C, HW)
    w = conv_weight.reshape(2 * KK).astype(jnp.float32)       # SMEM scalar taps

    kernel = functools.partial(_spatial_attention_kernel,
                               kernel_size=kernel_size, H=H, W=W, C=C)

    cost = pl.CostEstimate(
        flops=B * HW * (2 * C + 5 * KK),
        transcendentals=B * HW,
        bytes_accessed=B * C * HW * itemsize + B * HW * itemsize + 2 * KK * 4,
    )

    out_flat = pl.pallas_call(
        kernel,
        out_shape=jax.ShapeDtypeStruct((B, 1, HW), x.dtype),
        grid_spec=pltpu.PrefetchScalarGridSpec(
            num_scalar_prefetch=1,                            # conv taps -> SMEM
            grid=grid,
            in_specs=[pl.BlockSpec((batch_block, channel_block, HW),
                                   lambda b, c, w_s: (b, c, 0))],
            out_specs=pl.BlockSpec((batch_block, 1, HW),
                                   lambda b, c, w_s: (b, 0, 0)),
            scratch_shapes=[pltpu.VMEM((batch_block, HW), jnp.float32),   # running sum
                            pltpu.VMEM((batch_block, HW), jnp.float32)],  # running max
        ),
        compiler_params=pltpu.CompilerParams(
            # batch blocks are independent -> "parallel" (v7x megacore);
            # channel axis is the reduction -> last + "arbitrary".
            dimension_semantics=("parallel", "arbitrary"),
            vmem_limit_bytes=vmem_limit,
        ),
        cost_estimate=cost,
    )(w, x_l)

    # TODO(synk): for B<8 the reduction phase still under-fills sublanes; a
    # (Ct, B*HW//128, 128) view of the chunk would restore full vreg occupancy.
    return out_flat.reshape(B, 1, H, W)


def _reference(x, conv_weight, kernel_size=7):
    """Pure-JAX reference matching the PyTorch module."""
    pad = (kernel_size - 1) // 2
    avg = jnp.mean(x, axis=1, keepdims=True)
    mx = jnp.max(x, axis=1, keepdims=True)
    cat = jnp.concatenate([avg, mx], axis=1)                  # (B,2,H,W)
    out = lax.conv_general_dilated(
        cat.astype(jnp.float32),
        conv_weight.astype(jnp.float32),
        window_strides=(1, 1),
        padding=[(pad, pad), (pad, pad)],
        dimension_numbers=("NCHW", "OIHW", "NCHW"),
    )
    return jax.nn.sigmoid(out).astype(x.dtype)


if __name__ == "__main__":
    key = jax.random.PRNGKey(0)
    kx, kw7, kw3, kxb = jax.random.split(key, 4)

    # Test 1: module-default sizes, kernel_size=7, single channel chunk,
    # batch split across the parallel grid axis.
    B, C, H, W = 2, 4, 16, 16
    x = jax.random.normal(kx, (B, C, H, W), dtype=jnp.float32)
    w7 = jax.random.normal(kw7, (1, 2, 7, 7), dtype=jnp.float32) * 0.05
    out = jax.block_until_ready(spatial_attention(x, w7, 7))
    ref = jax.block_until_ready(_reference(x, w7, 7))
    assert out.shape == (B, 1, H, W)
    assert jnp.allclose(out, ref, atol=1e-3, rtol=1e-3), \
        float(jnp.max(jnp.abs(out - ref)))

    # Test 2: kernel_size=3 plus a forced channel-chunked reduction (2 chunks),
    # exercising the running-sum / running-max scratch accumulation path.
    B2, C2 = 2, 16
    x2 = jax.random.normal(kx, (B2, C2, H, W), dtype=jnp.float32)
    w3 = jax.random.normal(kw3, (1, 2, 3, 3), dtype=jnp.float32) * 0.1
    out2 = jax.block_until_ready(spatial_attention(x2, w3, 3, channel_block=8))
    ref2 = jax.block_until_ready(_reference(x2, w3, 3))
    assert jnp.allclose(out2, ref2, atol=1e-3, rtol=1e-3), \
        float(jnp.max(jnp.abs(out2 - ref2)))

    # Test 3: bf16 input (16-row sublane tiling for the channel block).
    B3, C3 = 2, 32
    x3 = jax.random.normal(kxb, (B3, C3, H, W), dtype=jnp.bfloat16)
    out3 = jax.block_until_ready(spatial_attention(x3, w7, 7))
    ref3 = jax.block_until_ready(_reference(x3, w7, 7))
    err3 = float(jnp.max(jnp.abs(out3.astype(jnp.float32) - ref3.astype(jnp.float32))))
    assert err3 < 2e-2, err3

    print("KERNEL_OK")
</pallas_src>

<mosaic_0001>
module attributes {stable_mosaic.version = 11 : i64} {
  func.func @_spatial_attention_kernel(%arg0: i32, %arg1: i32, %arg2: memref<98xf32, #tpu.memory_space<smem>>, %arg3: memref<1x4x256xf32, #tpu.memory_space<vmem>>, %arg4: memref<1x1x256xf32, #tpu.memory_space<vmem>>, %arg5: memref<1x256xf32, #tpu.memory_space<vmem>>, %arg6: memref<1x256xf32, #tpu.memory_space<vmem>>) attributes {dimension_semantics = [#tpu.dimension_semantics<parallel>, #tpu.dimension_semantics<arbitrary>], iteration_bounds = array<i64: 2, 1>, scalar_prefetch = 1 : i64, scratch_operands = 2 : i64, tpu.core_type = #tpu.core_type<tc>, window_params = [{transform_indices = @transform_0, window_bounds = array<i64: 1, 4, 256>}, {transform_indices = @transform_1, window_bounds = array<i64: 1, 1, 256>}]} {
    %c0_i32 = arith.constant 0 : i32
    %0 = arith.cmpi eq, %arg1, %c0_i32 : i32
    %1 = arith.extui %0 : i1 to i32
    %c0_i32_0 = arith.constant 0 : i32
    %2 = arith.cmpi ne, %1, %c0_i32_0 : i32
    scf.if %2 {
      %cst_14 = arith.constant 0.000000e+00 : f32
      %15 = vector.broadcast %cst_14 : f32 to vector<1x256xf32>
      %c0_15 = arith.constant 0 : index
      %c0_16 = arith.constant 0 : index
      %16 = vector.load %arg5[%c0_15, %c0_16] : memref<1x256xf32, #tpu.memory_space<vmem>>, vector<1x256xf32>
      tpu.vector_store %arg5[%c0_15, %c0_16], %15 {strides = array<i32>} : memref<1x256xf32, #tpu.memory_space<vmem>>, vector<1x256xf32>,
      %cst_17 = arith.constant 0xFF800000 : f32
      %17 = vector.broadcast %cst_17 : f32 to vector<1x256xf32>
      %c0_18 = arith.constant 0 : index
      %c0_19 = arith.constant 0 : index
      %18 = vector.load %arg6[%c0_18, %c0_19] : memref<1x256xf32, #tpu.memory_space<vmem>>, vector<1x256xf32>
      tpu.vector_store %arg6[%c0_18, %c0_19], %17 {strides = array<i32>} : memref<1x256xf32, #tpu.memory_space<vmem>>, vector<1x256xf32>,
    } else {
    }
    %c0 = arith.constant 0 : index
    %c0_1 = arith.constant 0 : index
    %c0_2 = arith.constant 0 : index
    %3 = vector.load %arg3[%c0, %c0_1, %c0_2] : memref<1x4x256xf32, #tpu.memory_space<vmem>>, vector<1x4x256xf32>
    %c0_3 = arith.constant 0 : index
    %c0_4 = arith.constant 0 : index
    %4 = vector.load %arg5[%c0_3, %c0_4] : memref<1x256xf32, #tpu.memory_space<vmem>>, vector<1x256xf32>
    %cst = arith.constant dense<0.000000e+00> : vector<1x256xf32>
    %5 = vector.multi_reduction <add>, %3, %cst [1] : vector<1x4x256xf32> to vector<1x256xf32>
    %6 = arith.addf %4, %5 : vector<1x256xf32>
    %c0_5 = arith.constant 0 : index
    %c0_6 = arith.constant 0 : index
    %7 = vector.load %arg5[%c0_5, %c0_6] : memref<1x256xf32, #tpu.memory_space<vmem>>, vector<1x256xf32>
    tpu.vector_store %arg5[%c0_5, %c0_6], %6 {strides = array<i32>} : memref<1x256xf32, #tpu.memory_space<vmem>>, vector<1x256xf32>,
    %c0_7 = arith.constant 0 : index
    %c0_8 = arith.constant 0 : index
    %8 = vector.load %arg6[%c0_7, %c0_8] : memref<1x256xf32, #tpu.memory_space<vmem>>, vector<1x256xf32>
    %cst_9 = arith.constant dense<0xFF800000> : vector<1x256xf32>
    %9 = vector.multi_reduction <maximumf>, %3, %cst_9 [1] : vector<1x4x256xf32> to vector<1x256xf32>
    %10 = arith.maximumf %8, %9 : vector<1x256xf32>
    %c0_10 = arith.constant 0 : index
    %c0_11 = arith.constant 0 : index
    %11 = vector.load %arg6[%c0_10, %c0_11] : memref<1x256xf32, #tpu.memory_space<vmem>>, vector<1x256xf32>
    tpu.vector_store %arg6[%c0_10, %c0_11], %10 {strides = array<i32>} : memref<1x256xf32, #tpu.memory_space<vmem>>, vector<1x256xf32>,
    %c0_i32_12 = arith.constant 0 : i32
    %12 = arith.cmpi eq, %arg1, %c0_i32_12 : i32
    %13 = arith.extui %12 : i1 to i32
    %c0_i32_13 = arith.constant 0 : i32
    %14 = arith.cmpi ne, %13, %c0_i32_13 : i32
    scf.if %14 {
      %c0_14 = arith.constant 0 : index
      %c0_15 = arith.constant 0 : index
      %15 = vector.load %arg5[%c0_14, %c0_15] : memref<1x256xf32, #tpu.memory_space<vmem>>, vector<1x256xf32>
      %cst_16 = arith.constant 2.500000e-01 : f32
      %16 = vector.broadcast %cst_16 : f32 to vector<1x256xf32>
      %17 = arith.mulf %15, %16 : vector<1x256xf32>
      %c0_17 = arith.constant 0 : index
      %c0_18 = arith.constant 0 : index
      %18 = vector.load %arg6[%c0_17, %c0_18] : memref<1x256xf32, #tpu.memory_space<vmem>>, vector<1x256xf32>
      %c0_19 = arith.constant 0 : index
      %19 = memref.load %arg2[%c0_19] : memref<98xf32, #tpu.memory_space<smem>>
      %c1 = arith.constant 1 : index
      %20 = memref.load %arg2[%c1] : memref<98xf32, #tpu.memory_space<smem>>
      %c2 = arith.constant 2 : index
      %21 = memref.load %arg2[%c2] : memref<98xf32, #tpu.memory_space<smem>>
      %c3 = arith.constant 3 : index
      %22 = memref.load %arg2[%c3] : memref<98xf32, #tpu.memory_space<smem>>
      %c4 = arith.constant 4 : index
      %23 = memref.load %arg2[%c4] : memref<98xf32, #tpu.memory_space<smem>>
      %c5 = arith.constant 5 : index
      %24 = memref.load %arg2[%c5] : memref<98xf32, #tpu.memory_space<smem>>
      %c6 = arith.constant 6 : index
      %25 = memref.load %arg2[%c6] : memref<98xf32, #tpu.memory_space<smem>>
      %c7 = arith.constant 7 : index
      %26 = memref.load %arg2[%c7] : memref<98xf32, #tpu.memory_space<smem>>
      %c8 = arith.constant 8 : index
      %27 = memref.load %arg2[%c8] : memref<98xf32, #tpu.memory_space<smem>>
      %c9 = arith.constant 9 : index
      %28 = memref.load %arg2[%c9] : memref<98xf32, #tpu.memory_space<smem>>
      %c10 = arith.constant 10 : index
      %29 = memref.load %arg2[%c10] : memref<98xf32, #tpu.memory_space<smem>>
      %c11 = arith.constant 11 : index
      %30 = memref.load %arg2[%c11] : memref<98xf32, #tpu.memory_space<smem>>
      %c12 = arith.constant 12 : index
      %31 = memref.load %arg2[%c12] : memref<98xf32, #tpu.memory_space<smem>>
      %c13 = arith.constant 13 : index
      %32 = memref.load %arg2[%c13] : memref<98xf32, #tpu.memory_space<smem>>
      %c14 = arith.constant 14 : index
      %33 = memref.load %arg2[%c14] : memref<98xf32, #tpu.memory_space<smem>>
      %c15 = arith.constant 15 : index
      %34 = memref.load %arg2[%c15] : memref<98xf32, #tpu.memory_space<smem>>
      %c16 = arith.constant 16 : index
      %35 = memref.load %arg2[%c16] : memref<98xf32, #tpu.memory_space<smem>>
      %c17 = arith.constant 17 : index
      %36 = memref.load %arg2[%c17] : memref<98xf32, #tpu.memory_space<smem>>
      %c18 = arith.constant 18 : index
      %37 = memref.load %arg2[%c18] : memref<98xf32, #tpu.memory_space<smem>>
      %c19 = arith.constant 19 : index
      %38 = memref.load %arg2[%c19] : memref<98xf32, #tpu.memory_space<smem>>
      %c20 = arith.constant 20 : index
      %39 = memref.load %arg2[%c20] : memref<98xf32, #tpu.memory_space<smem>>
      %c21 = arith.constant 21 : index
      %40 = memref.load %arg2[%c21] : memref<98xf32, #tpu.memory_space<smem>>
      %c22 = arith.constant 22 : index
      %41 = memref.load %arg2[%c22] : memref<98xf32, #tpu.memory_space<smem>>
      %c23 = arith.constant 23 : index
      %42 = memref.load %arg2[%c23] : memref<98xf32, #tpu.memory_space<smem>>
      %c24 = arith.constant 24 : index
      %43 = memref.load %arg2[%c24] : memref<98xf32, #tpu.memory_space<smem>>
      %c25 = arith.constant 25 : index
      %44 = memref.load %arg2[%c25] : memref<98xf32, #tpu.memory_space<smem>>
      %c26 = arith.constant 26 : index
      %45 = memref.load %arg2[%c26] : memref<98xf32, #tpu.memory_space<smem>>
      %c27 = arith.constant 27 : index
      %46 = memref.load %arg2[%c27] : memref<98xf32, #tpu.memory_space<smem>>
      %c28 = arith.constant 28 : index
      %47 = memref.load %arg2[%c28] : memref<98xf32, #tpu.memory_space<smem>>
      %c29 = arith.constant 29 : index
      %48 = memref.load %arg2[%c29] : memref<98xf32, #tpu.memory_space<smem>>
      %c30 = arith.constant 30 : index
      %49 = memref.load %arg2[%c30] : memref<98xf32, #tpu.memory_space<smem>>
      %c31 = arith.constant 31 : index
      %50 = memref.load %arg2[%c31] : memref<98xf32, #tpu.memory_space<smem>>
      %c32 = arith.constant 32 : index
      %51 = memref.load %arg2[%c32] : memref<98xf32, #tpu.memory_space<smem>>
      %c33 = arith.constant 33 : index
      %52 = memref.load %arg2[%c33] : memref<98xf32, #tpu.memory_space<smem>>
      %c34 = arith.constant 34 : index
      %53 = memref.load %arg2[%c34] : memref<98xf32, #tpu.memory_space<smem>>
      %c35 = arith.constant 35 : index
      %54 = memref.load %arg2[%c35] : memref<98xf32, #tpu.memory_space<smem>>
      %c36 = arith.constant 36 : index
      %55 = memref.load %arg2[%c36] : memref<98xf32, #tpu.memory_space<smem>>
      %c37 = arith.constant 37 : index
      %56 = memref.load %arg2[%c37] : memref<98xf32, #tpu.memory_space<smem>>
      %c38 = arith.constant 38 : index
      %57 = memref.load %arg2[%c38] : memref<98xf32, #tpu.memory_space<smem>>
      %c39 = arith.constant 39 : index
      %58 = memref.load %arg2[%c39] : memref<98xf32, #tpu.memory_space<smem>>
      %c40 = arith.constant 40 : index
      %59 = memref.load %arg2[%c40] : memref<98xf32, #tpu.memory_space<smem>>
      %c41 = arith.constant 41 : index
      %60 = memref.load %arg2[%c41] : memref<98xf32, #tpu.memory_space<smem>>
      %c42 = arith.constant 42 : index
      %61 = memref.load %arg2[%c42] : memref<98xf32, #tpu.memory_space<smem>>
      %c43 = arith.constant 43 : index
      %62 = memref.load %arg2[%c43] : memref<98xf32, #tpu.memory_space<smem>>
      %c44 = arith.constant 44 : index
      %63 = memref.load %arg2[%c44] : memref<98xf32, #tpu.memory_space<smem>>
      %c45 = arith.constant 45 : index
      %64 = memref.load %arg2[%c45] : memref<98xf32, #tpu.memory_space<smem>>
      %c46 = arith.constant 46 : index
      %65 = memref.load %arg2[%c46] : memref<98xf32, #tpu.memory_space<smem>>
      %c47 = arith.constant 47 : index
      %66 = memref.load %arg2[%c47] : memref<98xf32, #tpu.memory_space<smem>>
      %c48 = arith.constant 48 : index
      %67 = memref.load %arg2[%c48] : memref<98xf32, #tpu.memory_space<smem>>
      %c49 = arith.constant 49 : index
      %68 = memref.load %arg2[%c49] : memref<98xf32, #tpu.memory_space<smem>>
      %c50 = arith.constant 50 : index
      %69 = memref.load %arg2[%c50] : memref<98xf32, #tpu.memory_space<smem>>
      %c51 = arith.constant 51 : index
      %70 = memref.load %arg2[%c51] : memref<98xf32, #tpu.memory_space<smem>>
      %c52 = arith.constant 52 : index
      %71 = memref.load %arg2[%c52] : memref<98xf32, #tpu.memory_space<smem>>
      %c53 = arith.constant 53 : index
      %72 = memref.load %arg2[%c53] : memref<98xf32, #tpu.memory_space<smem>>
      %c54 = arith.constant 54 : index
      %73 = memref.load %arg2[%c54] : memref<98xf32, #tpu.memory_space<smem>>
      %c55 = arith.constant 55 : index
      %74 = memref.load %arg2[%c55] : memref<98xf32, #tpu.memory_space<smem>>
      %c56 = arith.constant 56 : index
      %75 = memref.load %arg2[%c56] : memref<98xf32, #tpu.memory_space<smem>>
      %c57 = arith.constant 57 : index
      %76 = memref.load %arg2[%c57] : memref<98xf32, #tpu.memory_space<smem>>
      %c58 = arith.constant 58 : index
      %77 = memref.load %arg2[%c58] : memref<98xf32, #tpu.memory_space<smem>>
      %c59 = arith.constant 59 : index
      %78 = memref.load %arg2[%c59] : memref<98xf32, #tpu.memory_space<smem>>
      %c60 = arith.constant 60 : index
      %79 = memref.load %arg2[%c60] : memref<98xf32, #tpu.memory_space<smem>>
      %c61 = arith.constant 61 : index
      %80 = memref.load %arg2[%c61] : memref<98xf32, #tpu.memory_space<smem>>
      %c62 = arith.constant 62 : index
      %81 = memref.load %arg2[%c62] : memref<98xf32, #tpu.memory_space<smem>>
      %c63 = arith.constant 63 : index
      %82 = memref.load %arg2[%c63] : memref<98xf32, #tpu.memory_space<smem>>
      %c64 = arith.constant 64 : index
      %83 = memref.load %arg2[%c64] : memref<98xf32, #tpu.memory_space<smem>>
      %c65 = arith.constant 65 : index
      %84 = memref.load %arg2[%c65] : memref<98xf32, #tpu.memory_space<smem>>
      %c66 = arith.constant 66 : index
      %85 = memref.load %arg2[%c66] : memref<98xf32, #tpu.memory_space<smem>>
      %c67 = arith.constant 67 : index
      %86 = memref.load %arg2[%c67] : memref<98xf32, #tpu.memory_space<smem>>
      %c68 = arith.constant 68 : index
      %87 = memref.load %arg2[%c68] : memref<98xf32, #tpu.memory_space<smem>>
      %c69 = arith.constant 69 : index
      %88 = memref.load %arg2[%c69] : memref<98xf32, #tpu.memory_space<smem>>
      %c70 = arith.constant 70 : index
      %89 = memref.load %arg2[%c70] : memref<98xf32, #tpu.memory_space<smem>>
      %c71 = arith.constant 71 : index
      %90 = memref.load %arg2[%c71] : memref<98xf32, #tpu.memory_space<smem>>
      %c72 = arith.constant 72 : index
      %91 = memref.load %arg2[%c72] : memref<98xf32, #tpu.memory_space<smem>>
      %c73 = arith.constant 73 : index
      %92 = memref.load %arg2[%c73] : memref<98xf32, #tpu.memory_space<smem>>
      %c74 = arith.constant 74 : index
      %93 = memref.load %arg2[%c74] : memref<98xf32, #tpu.memory_space<smem>>
      %c75 = arith.constant 75 : index
      %94 = memref.load %arg2[%c75] : memref<98xf32, #tpu.memory_space<smem>>
      %c76 = arith.constant 76 : index
      %95 = memref.load %arg2[%c76] : memref<98xf32, #tpu.memory_space<smem>>
      %c77 = arith.constant 77 : index
      %96 = memref.load %arg2[%c77] : memref<98xf32, #tpu.memory_space<smem>>
      %c78 = arith.constant 78 : index
      %97 = memref.load %arg2[%c78] : memref<98xf32, #tpu.memory_space<smem>>
      %c79 = arith.constant 79 : index
      %98 = memref.load %arg2[%c79] : memref<98xf32, #tpu.memory_space<smem>>
      %c80 = arith.constant 80 : index
      %99 = memref.load %arg2[%c80] : memref<98xf32, #tpu.memory_space<smem>>
      %c81 = arith.constant 81 : index
      %100 = memref.load %arg2[%c81] : memref<98xf32, #tpu.memory_space<smem>>
      %c82 = arith.constant 82 : index
      %101 = memref.load %arg2[%c82] : memref<98xf32, #tpu.memory_space<smem>>
      %c83 = arith.constant 83 : index
      %102 = memref.load %arg2[%c83] : memref<98xf32, #tpu.memory_space<smem>>
      %c84 = arith.constant 84 : index
      %103 = memref.load %arg2[%c84] : memref<98xf32, #tpu.memory_space<smem>>
      %c85 = arith.constant 85 : index
      %104 = memref.load %arg2[%c85] : memref<98xf32, #tpu.memory_space<smem>>
      %c86 = arith.constant 86 : index
      %105 = memref.load %arg2[%c86] : memref<98xf32, #tpu.memory_space<smem>>
      %c87 = arith.constant 87 : index
      %106 = memref.load %arg2[%c87] : memref<98xf32, #tpu.memory_space<smem>>
      %c88 = arith.constant 88 : index
      %107 = memref.load %arg2[%c88] : memref<98xf32, #tpu.memory_space<smem>>
      %c89 = arith.constant 89 : index
      %108 = memref.load %arg2[%c89] : memref<98xf32, #tpu.memory_space<smem>>
      %c90 = arith.constant 90 : index
      %109 = memref.load %arg2[%c90] : memref<98xf32, #tpu.memory_space<smem>>
      %c91 = arith.constant 91 : index
      %110 = memref.load %arg2[%c91] : memref<98xf32, #tpu.memory_space<smem>>
      %c92 = arith.constant 92 : index
      %111 = memref.load %arg2[%c92] : memref<98xf32, #tpu.memory_space<smem>>
      %c93 = arith.constant 93 : index
      %112 = memref.load %arg2[%c93] : memref<98xf32, #tpu.memory_space<smem>>
      %c94 = arith.constant 94 : index
      %113 = memref.load %arg2[%c94] : memref<98xf32, #tpu.memory_space<smem>>
      %c95 = arith.constant 95 : index
      %114 = memref.load %arg2[%c95] : memref<98xf32, #tpu.memory_space<smem>>
      %c96 = arith.constant 96 : index
      %115 = memref.load %arg2[%c96] : memref<98xf32, #tpu.memory_space<smem>>
      %c97 = arith.constant 97 : index
      %116 = memref.load %arg2[%c97] : memref<98xf32, #tpu.memory_space<smem>>
      %117 = tpu.iota {dimensions = array<i32: 1>} : vector<1x256xi32>
      %c15_i32 = arith.constant 15 : i32
      %118 = vector.broadcast %c15_i32 : i32 to vector<1x256xi32>
      %119 = arith.andi %117, %118 : vector<1x256xi32>
      %c3_i32 = arith.constant 3 : i32
      %120 = vector.broadcast %c3_i32 : i32 to vector<1x256xi32>
      %121 = arith.cmpi sge, %119, %120 : vector<1x256xi32>
      %c16_i32 = arith.constant 16 : i32
      %122 = vector.broadcast %c16_i32 : i32 to vector<1x256xi32>
      %123 = arith.cmpi slt, %119, %122 : vector<1x256xi32>
      %124 = arith.andi %121, %123 : vector<1x256xi1>
      %125 = arith.extui %124 : vector<1x256xi1> to vector<1x256xi32>
      %126 = arith.sitofp %125 : vector<1x256xi32> to vector<1x256xf32>
      %c2_i32 = arith.constant 2 : i32
      %127 = vector.broadcast %c2_i32 : i32 to vector<1x256xi32>
      %128 = arith.cmpi sge, %119, %127 : vector<1x256xi32>
      %c16_i32_20 = arith.constant 16 : i32
      %129 = vector.broadcast %c16_i32_20 : i32 to vector<1x256xi32>
      %130 = arith.cmpi slt, %119, %129 : vector<1x256xi32>
      %131 = arith.andi %128, %130 : vector<1x256xi1>
      %132 = arith.extui %131 : vector<1x256xi1> to vector<1x256xi32>
      %133 = arith.sitofp %132 : vector<1x256xi32> to vector<1x256xf32>
      %c1_i32 = arith.constant 1 : i32
      %134 = vector.broadcast %c1_i32 : i32 to vector<1x256xi32>
      %135 = arith.cmpi sge, %119, %134 : vector<1x256xi32>
      %c16_i32_21 = arith.constant 16 : i32
      %136 = vector.broadcast %c16_i32_21 : i32 to vector<1x256xi32>
      %137 = arith.cmpi slt, %119, %136 : vector<1x256xi32>
      %138 = arith.andi %135, %137 : vector<1x256xi1>
      %139 = arith.extui %138 : vector<1x256xi1> to vector<1x256xi32>
      %140 = arith.sitofp %139 : vector<1x256xi32> to vector<1x256xf32>
      %c0_i32_22 = arith.constant 0 : i32
      %141 = vector.broadcast %c0_i32_22 : i32 to vector<1x256xi32>
      %142 = arith.cmpi sge, %119, %141 : vector<1x256xi32>
      %c15_i32_23 = arith.constant 15 : i32
      %143 = vector.broadcast %c15_i32_23 : i32 to vector<1x256xi32>
      %144 = arith.cmpi slt, %119, %143 : vector<1x256xi32>
      %145 = arith.andi %142, %144 : vector<1x256xi1>
      %146 = arith.extui %145 : vector<1x256xi1> to vector<1x256xi32>
      %147 = arith.sitofp %146 : vector<1x256xi32> to vector<1x256xf32>
      %c0_i32_24 = arith.constant 0 : i32
      %148 = vector.broadcast %c0_i32_24 : i32 to vector<1x256xi32>
      %149 = arith.cmpi sge, %119, %148 : vector<1x256xi32>
      %c14_i32 = arith.constant 14 : i32
      %150 = vector.broadcast %c14_i32 : i32 to vector<1x256xi32>
      %151 = arith.cmpi slt, %119, %150 : vector<1x256xi32>
      %152 = arith.andi %149, %151 : vector<1x256xi1>
      %153 = arith.extui %152 : vector<1x256xi1> to vector<1x256xi32>
      %154 = arith.sitofp %153 : vector<1x256xi32> to vector<1x256xf32>
      %c0_i32_25 = arith.constant 0 : i32
      %155 = vector.broadcast %c0_i32_25 : i32 to vector<1x256xi32>
      %156 = arith.cmpi sge, %119, %155 : vector<1x256xi32>
      %c13_i32 = arith.constant 13 : i32
      %157 = vector.broadcast %c13_i32 : i32 to vector<1x256xi32>
      %158 = arith.cmpi slt, %119, %157 : vector<1x256xi32>
      %159 = arith.andi %156, %158 : vector<1x256xi1>
      %160 = arith.extui %159 : vector<1x256xi1> to vector<1x256xi32>
      %161 = arith.sitofp %160 : vector<1x256xi32> to vector<1x256xf32>
      %162 = vector.broadcast %19 : f32 to vector<1x256xf32>
      %163 = arith.mulf %162, %17 : vector<1x256xf32>
      %164 = vector.broadcast %68 : f32 to vector<1x256xf32>
      %165 = arith.mulf %164, %18 : vector<1x256xf32>
      %166 = arith.addf %163, %165 : vector<1x256xf32>
      %c51_i32 = arith.constant 51 : i32
      %167 = tpu.dynamic_rotate %166 by %c51_i32 dim 1 : vector<1x256xf32>, i32 -> vector<1x256xf32>
      %168 = arith.mulf %167, %126 : vector<1x256xf32>
      %169 = vector.broadcast %20 : f32 to vector<1x256xf32>
      %170 = arith.mulf %169, %17 : vector<1x256xf32>
      %171 = vector.broadcast %69 : f32 to vector<1x256xf32>
      %172 = arith.mulf %171, %18 : vector<1x256xf32>
      %173 = arith.addf %170, %172 : vector<1x256xf32>
      %c50_i32 = arith.constant 50 : i32
      %174 = tpu.dynamic_rotate %173 by %c50_i32 dim 1 : vector<1x256xf32>, i32 -> vector<1x256xf32>
      %175 = arith.mulf %174, %133 : vector<1x256xf32>
      %176 = arith.addf %168, %175 : vector<1x256xf32>
      %177 = vector.broadcast %21 : f32 to vector<1x256xf32>
      %178 = arith.mulf %177, %17 : vector<1x256xf32>
      %179 = vector.broadcast %70 : f32 to vector<1x256xf32>
      %180 = arith.mulf %179, %18 : vector<1x256xf32>
      %181 = arith.addf %178, %180 : vector<1x256xf32>
      %c49_i32 = arith.constant 49 : i32
      %182 = tpu.dynamic_rotate %181 by %c49_i32 dim 1 : vector<1x256xf32>, i32 -> vector<1x256xf32>
      %183 = arith.mulf %182, %140 : vector<1x256xf32>
      %184 = arith.addf %176, %183 : vector<1x256xf32>
      %185 = vector.broadcast %22 : f32 to vector<1x256xf32>
      %186 = arith.mulf %185, %17 : vector<1x256xf32>
      %187 = vector.broadcast %71 : f32 to vector<1x256xf32>
      %188 = arith.mulf %187, %18 : vector<1x256xf32>
      %189 = arith.addf %186, %188 : vector<1x256xf32>
      %c48_i32 = arith.constant 48 : i32
      %190 = tpu.dynamic_rotate %189 by %c48_i32 dim 1 : vector<1x256xf32>, i32 -> vector<1x256xf32>
      %191 = arith.addf %184, %190 : vector<1x256xf32>
      %192 = vector.broadcast %23 : f32 to vector<1x256xf32>
      %193 = arith.mulf %192, %17 : vector<1x256xf32>
      %194 = vector.broadcast %72 : f32 to vector<1x256xf32>
      %195 = arith.mulf %194, %18 : vector<1x256xf32>
      %196 = arith.addf %193, %195 : vector<1x256xf32>
      %c47_i32 = arith.constant 47 : i32
      %197 = tpu.dynamic_rotate %196 by %c47_i32 dim 1 : vector<1x256xf32>, i32 -> vector<1x256xf32>
      %198 = arith.mulf %197, %147 : vector<1x256xf32>
      %199 = arith.addf %191, %198 : vector<1x256xf32>
      %200 = vector.broadcast %24 : f32 to vector<1x256xf32>
      %201 = arith.mulf %200, %17 : vector<1x256xf32>
      %202 = vector.broadcast %73 : f32 to vector<1x256xf32>
      %203 = arith.mulf %202, %18 : vector<1x256xf32>
      %204 = arith.addf %201, %203 : vector<1x256xf32>
      %c46_i32 = arith.constant 46 : i32
      %205 = tpu.dynamic_rotate %204 by %c46_i32 dim 1 : vector<1x256xf32>, i32 -> vector<1x256xf32>
      %206 = arith.mulf %205, %154 : vector<1x256xf32>
      %207 = arith.addf %199, %206 : vector<1x256xf32>
      %208 = vector.broadcast %25 : f32 to vector<1x256xf32>
      %209 = arith.mulf %208, %17 : vector<1x256xf32>
      %210 = vector.broadcast %74 : f32 to vector<1x256xf32>
      %211 = arith.mulf %210, %18 : vector<1x256xf32>
      %212 = arith.addf %209, %211 : vector<1x256xf32>
      %c45_i32 = arith.constant 45 : i32
      %213 = tpu.dynamic_rotate %212 by %c45_i32 dim 1 : vector<1x256xf32>, i32 -> vector<1x256xf32>
      %214 = arith.mulf %213, %161 : vector<1x256xf32>
      %215 = arith.addf %207, %214 : vector<1x256xf32>
      %c48_i32_26 = arith.constant 48 : i32
      %216 = vector.broadcast %c48_i32_26 : i32 to vector<1x256xi32>
      %217 = arith.cmpi sge, %117, %216 : vector<1x256xi32>
      %c256_i32 = arith.constant 256 : i32
      %218 = vector.broadcast %c256_i32 : i32 to vector<1x256xi32>
      %219 = arith.cmpi slt, %117, %218 : vector<1x256xi32>
      %220 = arith.andi %217, %219 : vector<1x256xi1>
      %cst_27 = arith.constant 0.000000e+00 : f32
      %221 = vector.broadcast %cst_27 : f32 to vector<1x256xf32>
      %222 = arith.select %220, %215, %221 : vector<1x256xi1>, vector<1x256xf32>
      %223 = vector.broadcast %26 : f32 to vector<1x256xf32>
      %224 = arith.mulf %223, %17 : vector<1x256xf32>
      %225 = vector.broadcast %75 : f32 to vector<1x256xf32>
      %226 = arith.mulf %225, %18 : vector<1x256xf32>
      %227 = arith.addf %224, %226 : vector<1x256xf32>
      %c35_i32 = arith.constant 35 : i32
      %228 = tpu.dynamic_rotate %227 by %c35_i32 dim 1 : vector<1x256xf32>, i32 -> vector<1x256xf32>
      %229 = arith.mulf %228, %126 : vector<1x256xf32>
      %230 = vector.broadcast %27 : f32 to vector<1x256xf32>
      %231 = arith.mulf %230, %17 : vector<1x256xf32>
      %232 = vector.broadcast %76 : f32 to vector<1x256xf32>
      %233 = arith.mulf %232, %18 : vector<1x256xf32>
      %234 = arith.addf %231, %233 : vector<1x256xf32>
      %c34_i32 = arith.constant 34 : i32
      %235 = tpu.dynamic_rotate %234 by %c34_i32 dim 1 : vector<1x256xf32>, i32 -> vector<1x256xf32>
      %236 = arith.mulf %235, %133 : vector<1x256xf32>
      %237 = arith.addf %229, %236 : vector<1x256xf32>
      %238 = vector.broadcast %28 : f32 to vector<1x256xf32>
      %239 = arith.mulf %238, %17 : vector<1x256xf32>
      %240 = vector.broadcast %77 : f32 to vector<1x256xf32>
      %241 = arith.mulf %240, %18 : vector<1x256xf32>
      %242 = arith.addf %239, %241 : vector<1x256xf32>
      %c33_i32 = arith.constant 33 : i32
      %243 = tpu.dynamic_rotate %242 by %c33_i32 dim 1 : vector<1x256xf32>, i32 -> vector<1x256xf32>
      %244 = arith.mulf %243, %140 : vector<1x256xf32>
      %245 = arith.addf %237, %244 : vector<1x256xf32>
      %246 = vector.broadcast %29 : f32 to vector<1x256xf32>
      %247 = arith.mulf %246, %17 : vector<1x256xf32>
      %248 = vector.broadcast %78 : f32 to vector<1x256xf32>
      %249 = arith.mulf %248, %18 : vector<1x256xf32>
      %250 = arith.addf %247, %249 : vector<1x256xf32>
      %c32_i32 = arith.constant 32 : i32
      %251 = tpu.dynamic_rotate %250 by %c32_i32 dim 1 : vector<1x256xf32>, i32 -> vector<1x256xf32>
      %252 = arith.addf %245, %251 : vector<1x256xf32>
      %253 = vector.broadcast %30 : f32 to vector<1x256xf32>
      %254 = arith.mulf %253, %17 : vector<1x256xf32>
      %255 = vector.broadcast %79 : f32 to vector<1x256xf32>
      %256 = arith.mulf %255, %18 : vector<1x256xf32>
      %257 = arith.addf %254, %256 : vector<1x256xf32>
      %c31_i32 = arith.constant 31 : i32
      %258 = tpu.dynamic_rotate %257 by %c31_i32 dim 1 : vector<1x256xf32>, i32 -> vector<1x256xf32>
      %259 = arith.mulf %258, %147 : vector<1x256xf32>
      %260 = arith.addf %252, %259 : vector<1x256xf32>
      %261 = vector.broadcast %31 : f32 to vector<1x256xf32>
      %262 = arith.mulf %261, %17 : vector<1x256xf32>
      %263 = vector.broadcast %80 : f32 to vector<1x256xf32>
      %264 = arith.mulf %263, %18 : vector<1x256xf32>
      %265 = arith.addf %262, %264 : vector<1x256xf32>
      %c30_i32 = arith.constant 30 : i32
      %266 = tpu.dynamic_rotate %265 by %c30_i32 dim 1 : vector<1x256xf32>, i32 -> vector<1x256xf32>
      %267 = arith.mulf %266, %154 : vector<1x256xf32>
      %268 = arith.addf %260, %267 : vector<1x256xf32>
      %269 = vector.broadcast %32 : f32 to vector<1x256xf32>
      %270 = arith.mulf %269, %17 : vector<1x256xf32>
      %271 = vector.broadcast %81 : f32 to vector<1x256xf32>
      %272 = arith.mulf %271, %18 : vector<1x256xf32>
      %273 = arith.addf %270, %272 : vector<1x256xf32>
      %c29_i32 = arith.constant 29 : i32
      %274 = tpu.dynamic_rotate %273 by %c29_i32 dim 1 : vector<1x256xf32>, i32 -> vector<1x256xf32>
      %275 = arith.mulf %274, %161 : vector<1x256xf32>
      %276 = arith.addf %268, %275 : vector<1x256xf32>
      %c32_i32_28 = arith.constant 32 : i32
      %277 = vector.broadcast %c32_i32_28 : i32 to vector<1x256xi32>
      %278 = arith.cmpi sge, %117, %277 : vector<1x256xi32>
      %c256_i32_29 = arith.constant 256 : i32
      %279 = vector.broadcast %c256_i32_29 : i32 to vector<1x256xi32>
      %280 = arith.cmpi slt, %117, %279 : vector<1x256xi32>
      %281 = arith.andi %278, %280 : vector<1x256xi1>
      %cst_30 = arith.constant 0.000000e+00 : f32
      %282 = vector.broadcast %cst_30 : f32 to vector<1x256xf32>
      %283 = arith.select %281, %276, %282 : vector<1x256xi1>, vector<1x256xf32>
      %284 = vector.broadcast %33 : f32 to vector<1x256xf32>
      %285 = arith.mulf %284, %17 : vector<1x256xf32>
      %286 = vector.broadcast %82 : f32 to vector<1x256xf32>
      %287 = arith.mulf %286, %18 : vector<1x256xf32>
      %288 = arith.addf %285, %287 : vector<1x256xf32>
      %c19_i32 = arith.constant 19 : i32
      %289 = tpu.dynamic_rotate %288 by %c19_i32 dim 1 : vector<1x256xf32>, i32 -> vector<1x256xf32>
      %290 = arith.mulf %289, %126 : vector<1x256xf32>
      %291 = vector.broadcast %34 : f32 to vector<1x256xf32>
      %292 = arith.mulf %291, %17 : vector<1x256xf32>
      %293 = vector.broadcast %83 : f32 to vector<1x256xf32>
      %294 = arith.mulf %293, %18 : vector<1x256xf32>
      %295 = arith.addf %292, %294 : vector<1x256xf32>
      %c18_i32 = arith.constant 18 : i32
      %296 = tpu.dynamic_rotate %295 by %c18_i32 dim 1 : vector<1x256xf32>, i32 -> vector<1x256xf32>
      %297 = arith.mulf %296, %133 : vector<1x256xf32>
      %298 = arith.addf %290, %297 : vector<1x256xf32>
      %299 = vector.broadcast %35 : f32 to vector<1x256xf32>
      %300 = arith.mulf %299, %17 : vector<1x256xf32>
      %301 = vector.broadcast %84 : f32 to vector<1x256xf32>
      %302 = arith.mulf %301, %18 : vector<1x256xf32>
      %303 = arith.addf %300, %302 : vector<1x256xf32>
      %c17_i32 = arith.constant 17 : i32
      %304 = tpu.dynamic_rotate %303 by %c17_i32 dim 1 : vector<1x256xf32>, i32 -> vector<1x256xf32>
      %305 = arith.mulf %304, %140 : vector<1x256xf32>
      %306 = arith.addf %298, %305 : vector<1x256xf32>
      %307 = vector.broadcast %36 : f32 to vector<1x256xf32>
      %308 = arith.mulf %307, %17 : vector<1x256xf32>
      %309 = vector.broadcast %85 : f32 to vector<1x256xf32>
      %310 = arith.mulf %309, %18 : vector<1x256xf32>
      %311 = arith.addf %308, %310 : vector<1x256xf32>
      %c16_i32_31 = arith.constant 16 : i32
      %312 = tpu.dynamic_rotate %311 by %c16_i32_31 dim 1 : vector<1x256xf32>, i32 -> vector<1x256xf32>
      %313 = arith.addf %306, %312 : vector<1x256xf32>
      %314 = vector.broadcast %37 : f32 to vector<1x256xf32>
      %315 = arith.mulf %314, %17 : vector<1x256xf32>
      %316 = vector.broadcast %86 : f32 to vector<1x256xf32>
      %317 = arith.mulf %316, %18 : vector<1x256xf32>
      %318 = arith.addf %315, %317 : vector<1x256xf32>
      %c15_i32_32 = arith.constant 15 : i32
      %319 = tpu.dynamic_rotate %318 by %c15_i32_32 dim 1 : vector<1x256xf32>, i32 -> vector<1x256xf32>
      %320 = arith.mulf %319, %147 : vector<1x256xf32>
      %321 = arith.addf %313, %320 : vector<1x256xf32>
      %322 = vector.broadcast %38 : f32 to vector<1x256xf32>
      %323 = arith.mulf %322, %17 : vector<1x256xf32>
      %324 = vector.broadcast %87 : f32 to vector<1x256xf32>
      %325 = arith.mulf %324, %18 : vector<1x256xf32>
      %326 = arith.addf %323, %325 : vector<1x256xf32>
      %c14_i32_33 = arith.constant 14 : i32
      %327 = tpu.dynamic_rotate %326 by %c14_i32_33 dim 1 : vector<1x256xf32>, i32 -> vector<1x256xf32>
      %328 = arith.mulf %327, %154 : vector<1x256xf32>
      %329 = arith.addf %321, %328 : vector<1x256xf32>
      %330 = vector.broadcast %39 : f32 to vector<1x256xf32>
      %331 = arith.mulf %330, %17 : vector<1x256xf32>
      %332 = vector.broadcast %88 : f32 to vector<1x256xf32>
      %333 = arith.mulf %332, %18 : vector<1x256xf32>
      %334 = arith.addf %331, %333 : vector<1x256xf32>
      %c13_i32_34 = arith.constant 13 : i32
      %335 = tpu.dynamic_rotate %334 by %c13_i32_34 dim 1 : vector<1x256xf32>, i32 -> vector<1x256xf32>
      %336 = arith.mulf %335, %161 : vector<1x256xf32>
      %337 = arith.addf %329, %336 : vector<1x256xf32>
      %c16_i32_35 = arith.constant 16 : i32
      %338 = vector.broadcast %c16_i32_35 : i32 to vector<1x256xi32>
      %339 = arith.cmpi sge, %117, %338 : vector<1x256xi32>
      %c256_i32_36 = arith.constant 256 : i32
      %340 = vector.broadcast %c256_i32_36 : i32 to vector<1x256xi32>
      %341 = arith.cmpi slt, %117, %340 : vector<1x256xi32>
      %342 = arith.andi %339, %341 : vector<1x256xi1>
      %cst_37 = arith.constant 0.000000e+00 : f32
      %343 = vector.broadcast %cst_37 : f32 to vector<1x256xf32>
      %344 = arith.select %342, %337, %343 : vector<1x256xi1>, vector<1x256xf32>
      %345 = vector.broadcast %40 : f32 to vector<1x256xf32>
      %346 = arith.mulf %345, %17 : vector<1x256xf32>
      %347 = vector.broadcast %89 : f32 to vector<1x256xf32>
      %348 = arith.mulf %347, %18 : vector<1x256xf32>
      %349 = arith.addf %346, %348 : vector<1x256xf32>
      %c3_i32_38 = arith.constant 3 : i32
      %350 = tpu.dynamic_rotate %349 by %c3_i32_38 dim 1 : vector<1x256xf32>, i32 -> vector<1x256xf32>
      %351 = arith.mulf %350, %126 : vector<1x256xf32>
      %352 = vector.broadcast %41 : f32 to vector<1x256xf32>
      %353 = arith.mulf %352, %17 : vector<1x256xf32>
      %354 = vector.broadcast %90 : f32 to vector<1x256xf32>
      %355 = arith.mulf %354, %18 : vector<1x256xf32>
      %356 = arith.addf %353, %355 : vector<1x256xf32>
      %c2_i32_39 = arith.constant 2 : i32
      %357 = tpu.dynamic_rotate %356 by %c2_i32_39 dim 1 : vector<1x256xf32>, i32 -> vector<1x256xf32>
      %358 = arith.mulf %357, %133 : vector<1x256xf32>
      %359 = arith.addf %351, %358 : vector<1x256xf32>
      %360 = vector.broadcast %42 : f32 to vector<1x256xf32>
      %361 = arith.mulf %360, %17 : vector<1x256xf32>
      %362 = vector.broadcast %91 : f32 to vector<1x256xf32>
      %363 = arith.mulf %362, %18 : vector<1x256xf32>
      %364 = arith.addf %361, %363 : vector<1x256xf32>
      %c1_i32_40 = arith.constant 1 : i32
      %365 = tpu.dynamic_rotate %364 by %c1_i32_40 dim 1 : vector<1x256xf32>, i32 -> vector<1x256xf32>
      %366 = arith.mulf %365, %140 : vector<1x256xf32>
      %367 = arith.addf %359, %366 : vector<1x256xf32>
      %368 = vector.broadcast %43 : f32 to vector<1x256xf32>
      %369 = arith.mulf %368, %17 : vector<1x256xf32>
      %370 = vector.broadcast %92 : f32 to vector<1x256xf32>
      %371 = arith.mulf %370, %18 : vector<1x256xf32>
      %372 = arith.addf %369, %371 : vector<1x256xf32>
      %373 = arith.addf %367, %372 : vector<1x256xf32>
      %374 = vector.broadcast %44 : f32 to vector<1x256xf32>
      %375 = arith.mulf %374, %17 : vector<1x256xf32>
      %376 = vector.broadcast %93 : f32 to vector<1x256xf32>
      %377 = arith.mulf %376, %18 : vector<1x256xf32>
      %378 = arith.addf %375, %377 : vector<1x256xf32>
      %c255_i32 = arith.constant 255 : i32
      %379 = tpu.dynamic_rotate %378 by %c255_i32 dim 1 : vector<1x256xf32>, i32 -> vector<1x256xf32>
      %380 = arith.mulf %379, %147 : vector<1x256xf32>
      %381 = arith.addf %373, %380 : vector<1x256xf32>
      %382 = vector.broadcast %45 : f32 to vector<1x256xf32>
      %383 = arith.mulf %382, %17 : vector<1x256xf32>
      %384 = vector.broadcast %94 : f32 to vector<1x256xf32>
      %385 = arith.mulf %384, %18 : vector<1x256xf32>
      %386 = arith.addf %383, %385 : vector<1x256xf32>
      %c254_i32 = arith.constant 254 : i32
      %387 = tpu.dynamic_rotate %386 by %c254_i32 dim 1 : vector<1x256xf32>, i32 -> vector<1x256xf32>
      %388 = arith.mulf %387, %154 : vector<1x256xf32>
      %389 = arith.addf %381, %388 : vector<1x256xf32>
      %390 = vector.broadcast %46 : f32 to vector<1x256xf32>
      %391 = arith.mulf %390, %17 : vector<1x256xf32>
      %392 = vector.broadcast %95 : f32 to vector<1x256xf32>
      %393 = arith.mulf %392, %18 : vector<1x256xf32>
      %394 = arith.addf %391, %393 : vector<1x256xf32>
      %c253_i32 = arith.constant 253 : i32
      %395 = tpu.dynamic_rotate %394 by %c253_i32 dim 1 : vector<1x256xf32>, i32 -> vector<1x256xf32>
      %396 = arith.mulf %395, %161 : vector<1x256xf32>
      %397 = arith.addf %389, %396 : vector<1x256xf32>
      %398 = vector.broadcast %47 : f32 to vector<1x256xf32>
      %399 = arith.mulf %398, %17 : vector<1x256xf32>
      %400 = vector.broadcast %96 : f32 to vector<1x256xf32>
      %401 = arith.mulf %400, %18 : vector<1x256xf32>
      %402 = arith.addf %399, %401 : vector<1x256xf32>
      %c243_i32 = arith.constant 243 : i32
      %403 = tpu.dynamic_rotate %402 by %c243_i32 dim 1 : vector<1x256xf32>, i32 -> vector<1x256xf32>
      %404 = arith.mulf %403, %126 : vector<1x256xf32>
      %405 = vector.broadcast %48 : f32 to vector<1x256xf32>
      %406 = arith.mulf %405, %17 : vector<1x256xf32>
      %407 = vector.broadcast %97 : f32 to vector<1x256xf32>
      %408 = arith.mulf %407, %18 : vector<1x256xf32>
      %409 = arith.addf %406, %408 : vector<1x256xf32>
      %c242_i32 = arith.constant 242 : i32
      %410 = tpu.dynamic_rotate %409 by %c242_i32 dim 1 : vector<1x256xf32>, i32 -> vector<1x256xf32>
      %411 = arith.mulf %410, %133 : vector<1x256xf32>
      %412 = arith.addf %404, %411 : vector<1x256xf32>
      %413 = vector.broadcast %49 : f32 to vector<1x256xf32>
      %414 = arith.mulf %413, %17 : vector<1x256xf32>
      %415 = vector.broadcast %98 : f32 to vector<1x256xf32>
      %416 = arith.mulf %415, %18 : vector<1x256xf32>
      %417 = arith.addf %414, %416 : vector<1x256xf32>
      %c241_i32 = arith.constant 241 : i32
      %418 = tpu.dynamic_rotate %417 by %c241_i32 dim 1 : vector<1x256xf32>, i32 -> vector<1x256xf32>
      %419 = arith.mulf %418, %140 : vector<1x256xf32>
      %420 = arith.addf %412, %419 : vector<1x256xf32>
      %421 = vector.broadcast %50 : f32 to vector<1x256xf32>
      %422 = arith.mulf %421, %17 : vector<1x256xf32>
      %423 = vector.broadcast %99 : f32 to vector<1x256xf32>
      %424 = arith.mulf %423, %18 : vector<1x256xf32>
      %425 = arith.addf %422, %424 : vector<1x256xf32>
      %c240_i32 = arith.constant 240 : i32
      %426 = tpu.dynamic_rotate %425 by %c240_i32 dim 1 : vector<1x256xf32>, i32 -> vector<1x256xf32>
      %427 = arith.addf %420, %426 : vector<1x256xf32>
      %428 = vector.broadcast %51 : f32 to vector<1x256xf32>
      %429 = arith.mulf %428, %17 : vector<1x256xf32>
      %430 = vector.broadcast %100 : f32 to vector<1x256xf32>
      %431 = arith.mulf %430, %18 : vector<1x256xf32>
      %432 = arith.addf %429, %431 : vector<1x256xf32>
      %c239_i32 = arith.constant 239 : i32
      %433 = tpu.dynamic_rotate %432 by %c239_i32 dim 1 : vector<1x256xf32>, i32 -> vector<1x256xf32>
      %434 = arith.mulf %433, %147 : vector<1x256xf32>
      %435 = arith.addf %427, %434 : vector<1x256xf32>
      %436 = vector.broadcast %52 : f32 to vector<1x256xf32>
      %437 = arith.mulf %436, %17 : vector<1x256xf32>
      %438 = vector.broadcast %101 : f32 to vector<1x256xf32>
      %439 = arith.mulf %438, %18 : vector<1x256xf32>
      %440 = arith.addf %437, %439 : vector<1x256xf32>
      %c238_i32 = arith.constant 238 : i32
      %441 = tpu.dynamic_rotate %440 by %c238_i32 dim 1 : vector<1x256xf32>, i32 -> vector<1x256xf32>
      %442 = arith.mulf %441, %154 : vector<1x256xf32>
      %443 = arith.addf %435, %442 : vector<1x256xf32>
      %444 = vector.broadcast %53 : f32 to vector<1x256xf32>
      %445 = arith.mulf %444, %17 : vector<1x256xf32>
      %446 = vector.broadcast %102 : f32 to vector<1x256xf32>
      %447 = arith.mulf %446, %18 : vector<1x256xf32>
      %448 = arith.addf %445, %447 : vector<1x256xf32>
      %c237_i32 = arith.constant 237 : i32
      %449 = tpu.dynamic_rotate %448 by %c237_i32 dim 1 : vector<1x256xf32>, i32 -> vector<1x256xf32>
      %450 = arith.mulf %449, %161 : vector<1x256xf32>
      %451 = arith.addf %443, %450 : vector<1x256xf32>
      %c0_i32_41 = arith.constant 0 : i32
      %452 = vector.broadcast %c0_i32_41 : i32 to vector<1x256xi32>
      %453 = arith.cmpi sge, %117, %452 : vector<1x256xi32>
      %c240_i32_42 = arith.constant 240 : i32
      %454 = vector.broadcast %c240_i32_42 : i32 to vector<1x256xi32>
      %455 = arith.cmpi slt, %117, %454 : vector<1x256xi32>
      %456 = arith.andi %453, %455 : vector<1x256xi1>
      %cst_43 = arith.constant 0.000000e+00 : f32
      %457 = vector.broadcast %cst_43 : f32 to vector<1x256xf32>
      %458 = arith.select %456, %451, %457 : vector<1x256xi1>, vector<1x256xf32>
      %459 = arith.addf %222, %458 : vector<1x256xf32>
      %460 = vector.broadcast %54 : f32 to vector<1x256xf32>
      %461 = arith.mulf %460, %17 : vector<1x256xf32>
      %462 = vector.broadcast %103 : f32 to vector<1x256xf32>
      %463 = arith.mulf %462, %18 : vector<1x256xf32>
      %464 = arith.addf %461, %463 : vector<1x256xf32>
      %c227_i32 = arith.constant 227 : i32
      %465 = tpu.dynamic_rotate %464 by %c227_i32 dim 1 : vector<1x256xf32>, i32 -> vector<1x256xf32>
      %466 = arith.mulf %465, %126 : vector<1x256xf32>
      %467 = vector.broadcast %55 : f32 to vector<1x256xf32>
      %468 = arith.mulf %467, %17 : vector<1x256xf32>
      %469 = vector.broadcast %104 : f32 to vector<1x256xf32>
      %470 = arith.mulf %469, %18 : vector<1x256xf32>
      %471 = arith.addf %468, %470 : vector<1x256xf32>
      %c226_i32 = arith.constant 226 : i32
      %472 = tpu.dynamic_rotate %471 by %c226_i32 dim 1 : vector<1x256xf32>, i32 -> vector<1x256xf32>
      %473 = arith.mulf %472, %133 : vector<1x256xf32>
      %474 = arith.addf %466, %473 : vector<1x256xf32>
      %475 = vector.broadcast %56 : f32 to vector<1x256xf32>
      %476 = arith.mulf %475, %17 : vector<1x256xf32>
      %477 = vector.broadcast %105 : f32 to vector<1x256xf32>
      %478 = arith.mulf %477, %18 : vector<1x256xf32>
      %479 = arith.addf %476, %478 : vector<1x256xf32>
      %c225_i32 = arith.constant 225 : i32
      %480 = tpu.dynamic_rotate %479 by %c225_i32 dim 1 : vector<1x256xf32>, i32 -> vector<1x256xf32>
      %481 = arith.mulf %480, %140 : vector<1x256xf32>
      %482 = arith.addf %474, %481 : vector<1x256xf32>
      %483 = vector.broadcast %57 : f32 to vector<1x256xf32>
      %484 = arith.mulf %483, %17 : vector<1x256xf32>
      %485 = vector.broadcast %106 : f32 to vector<1x256xf32>
      %486 = arith.mulf %485, %18 : vector<1x256xf32>
      %487 = arith.addf %484, %486 : vector<1x256xf32>
      %c224_i32 = arith.constant 224 : i32
      %488 = tpu.dynamic_rotate %487 by %c224_i32 dim 1 : vector<1x256xf32>, i32 -> vector<1x256xf32>
      %489 = arith.addf %482, %488 : vector<1x256xf32>
      %490 = vector.broadcast %58 : f32 to vector<1x256xf32>
      %491 = arith.mulf %490, %17 : vector<1x256xf32>
      %492 = vector.broadcast %107 : f32 to vector<1x256xf32>
      %493 = arith.mulf %492, %18 : vector<1x256xf32>
      %494 = arith.addf %491, %493 : vector<1x256xf32>
      %c223_i32 = arith.constant 223 : i32
      %495 = tpu.dynamic_rotate %494 by %c223_i32 dim 1 : vector<1x256xf32>, i32 -> vector<1x256xf32>
      %496 = arith.mulf %495, %147 : vector<1x256xf32>
      %497 = arith.addf %489, %496 : vector<1x256xf32>
      %498 = vector.broadcast %59 : f32 to vector<1x256xf32>
      %499 = arith.mulf %498, %17 : vector<1x256xf32>
      %500 = vector.broadcast %108 : f32 to vector<1x256xf32>
      %501 = arith.mulf %500, %18 : vector<1x256xf32>
      %502 = arith.addf %499, %501 : vector<1x256xf32>
      %c222_i32 = arith.constant 222 : i32
      %503 = tpu.dynamic_rotate %502 by %c222_i32 dim 1 : vector<1x256xf32>, i32 -> vector<1x256xf32>
      %504 = arith.mulf %503, %154 : vector<1x256xf32>
      %505 = arith.addf %497, %504 : vector<1x256xf32>
      %506 = vector.broadcast %60 : f32 to vector<1x256xf32>
      %507 = arith.mulf %506, %17 : vector<1x256xf32>
      %508 = vector.broadcast %109 : f32 to vector<1x256xf32>
      %509 = arith.mulf %508, %18 : vector<1x256xf32>
      %510 = arith.addf %507, %509 : vector<1x256xf32>
      %c221_i32 = arith.constant 221 : i32
      %511 = tpu.dynamic_rotate %510 by %c221_i32 dim 1 : vector<1x256xf32>, i32 -> vector<1x256xf32>
      %512 = arith.mulf %511, %161 : vector<1x256xf32>
      %513 = arith.addf %505, %512 : vector<1x256xf32>
      %c0_i32_44 = arith.constant 0 : i32
      %514 = vector.broadcast %c0_i32_44 : i32 to vector<1x256xi32>
      %515 = arith.cmpi sge, %117, %514 : vector<1x256xi32>
      %c224_i32_45 = arith.constant 224 : i32
      %516 = vector.broadcast %c224_i32_45 : i32 to vector<1x256xi32>
      %517 = arith.cmpi slt, %117, %516 : vector<1x256xi32>
      %518 = arith.andi %515, %517 : vector<1x256xi1>
      %cst_46 = arith.constant 0.000000e+00 : f32
      %519 = vector.broadcast %cst_46 : f32 to vector<1x256xf32>
      %520 = arith.select %518, %513, %519 : vector<1x256xi1>, vector<1x256xf32>
      %521 = arith.addf %283, %520 : vector<1x256xf32>
      %522 = vector.broadcast %61 : f32 to vector<1x256xf32>
      %523 = arith.mulf %522, %17 : vector<1x256xf32>
      %524 = vector.broadcast %110 : f32 to vector<1x256xf32>
      %525 = arith.mulf %524, %18 : vector<1x256xf32>
      %526 = arith.addf %523, %525 : vector<1x256xf32>
      %c211_i32 = arith.constant 211 : i32
      %527 = tpu.dynamic_rotate %526 by %c211_i32 dim 1 : vector<1x256xf32>, i32 -> vector<1x256xf32>
      %528 = arith.mulf %527, %126 : vector<1x256xf32>
      %529 = vector.broadcast %62 : f32 to vector<1x256xf32>
      %530 = arith.mulf %529, %17 : vector<1x256xf32>
      %531 = vector.broadcast %111 : f32 to vector<1x256xf32>
      %532 = arith.mulf %531, %18 : vector<1x256xf32>
      %533 = arith.addf %530, %532 : vector<1x256xf32>
      %c210_i32 = arith.constant 210 : i32
      %534 = tpu.dynamic_rotate %533 by %c210_i32 dim 1 : vector<1x256xf32>, i32 -> vector<1x256xf32>
      %535 = arith.mulf %534, %133 : vector<1x256xf32>
      %536 = arith.addf %528, %535 : vector<1x256xf32>
      %537 = vector.broadcast %63 : f32 to vector<1x256xf32>
      %538 = arith.mulf %537, %17 : vector<1x256xf32>
      %539 = vector.broadcast %112 : f32 to vector<1x256xf32>
      %540 = arith.mulf %539, %18 : vector<1x256xf32>
      %541 = arith.addf %538, %540 : vector<1x256xf32>
      %c209_i32 = arith.constant 209 : i32
      %542 = tpu.dynamic_rotate %541 by %c209_i32 dim 1 : vector<1x256xf32>, i32 -> vector<1x256xf32>
      %543 = arith.mulf %542, %140 : vector<1x256xf32>
      %544 = arith.addf %536, %543 : vector<1x256xf32>
      %545 = vector.broadcast %64 : f32 to vector<1x256xf32>
      %546 = arith.mulf %545, %17 : vector<1x256xf32>
      %547 = vector.broadcast %113 : f32 to vector<1x256xf32>
      %548 = arith.mulf %547, %18 : vector<1x256xf32>
      %549 = arith.addf %546, %548 : vector<1x256xf32>
      %c208_i32 = arith.constant 208 : i32
      %550 = tpu.dynamic_rotate %549 by %c208_i32 dim 1 : vector<1x256xf32>, i32 -> vector<1x256xf32>
      %551 = arith.addf %544, %550 : vector<1x256xf32>
      %552 = vector.broadcast %65 : f32 to vector<1x256xf32>
      %553 = arith.mulf %552, %17 : vector<1x256xf32>
      %554 = vector.broadcast %114 : f32 to vector<1x256xf32>
      %555 = arith.mulf %554, %18 : vector<1x256xf32>
      %556 = arith.addf %553, %555 : vector<1x256xf32>
      %c207_i32 = arith.constant 207 : i32
      %557 = tpu.dynamic_rotate %556 by %c207_i32 dim 1 : vector<1x256xf32>, i32 -> vector<1x256xf32>
      %558 = arith.mulf %557, %147 : vector<1x256xf32>
      %559 = arith.addf %551, %558 : vector<1x256xf32>
      %560 = vector.broadcast %66 : f32 to vector<1x256xf32>
      %561 = arith.mulf %560, %17 : vector<1x256xf32>
      %562 = vector.broadcast %115 : f32 to vector<1x256xf32>
      %563 = arith.mulf %562, %18 : vector<1x256xf32>
      %564 = arith.addf %561, %563 : vector<1x256xf32>
      %c206_i32 = arith.constant 206 : i32
      %565 = tpu.dynamic_rotate %564 by %c206_i32 dim 1 : vector<1x256xf32>, i32 -> vector<1x256xf32>
      %566 = arith.mulf %565, %154 : vector<1x256xf32>
      %567 = arith.addf %559, %566 : vector<1x256xf32>
      %568 = vector.broadcast %67 : f32 to vector<1x256xf32>
      %569 = arith.mulf %568, %17 : vector<1x256xf32>
      %570 = vector.broadcast %116 : f32 to vector<1x256xf32>
      %571 = arith.mulf %570, %18 : vector<1x256xf32>
      %572 = arith.addf %569, %571 : vector<1x256xf32>
      %c205_i32 = arith.constant 205 : i32
      %573 = tpu.dynamic_rotate %572 by %c205_i32 dim 1 : vector<1x256xf32>, i32 -> vector<1x256xf32>
      %574 = arith.mulf %573, %161 : vector<1x256xf32>
      %575 = arith.addf %567, %574 : vector<1x256xf32>
      %c0_i32_47 = arith.constant 0 : i32
      %576 = vector.broadcast %c0_i32_47 : i32 to vector<1x256xi32>
      %577 = arith.cmpi sge, %117, %576 : vector<1x256xi32>
      %c208_i32_48 = arith.constant 208 : i32
      %578 = vector.broadcast %c208_i32_48 : i32 to vector<1x256xi32>
      %579 = arith.cmpi slt, %117, %578 : vector<1x256xi32>
      %580 = arith.andi %577, %579 : vector<1x256xi1>
      %cst_49 = arith.constant 0.000000e+00 : f32
      %581 = vector.broadcast %cst_49 : f32 to vector<1x256xf32>
      %582 = arith.select %580, %575, %581 : vector<1x256xi1>, vector<1x256xf32>
      %583 = arith.addf %344, %582 : vector<1x256xf32>
      %584 = arith.addf %459, %521 : vector<1x256xf32>
      %585 = arith.addf %583, %397 : vector<1x256xf32>
      %586 = arith.addf %584, %585 : vector<1x256xf32>
      %587 = arith.negf %586 : vector<1x256xf32>
      %588 = math.exp %587 : vector<1x256xf32>
      %cst_50 = arith.constant 1.000000e+00 : f32
      %589 = vector.broadcast %cst_50 : f32 to vector<1x256xf32>
      %590 = arith.addf %589, %588 : vector<1x256xf32>
      %591 = arith.divf %589, %590 : vector<1x256xf32>
      %592 = vector.shape_cast %591 : vector<1x256xf32> to vector<1x1x256xf32>
      %c0_51 = arith.constant 0 : index
      %c0_52 = arith.constant 0 : index
      %c0_53 = arith.constant 0 : index
      %593 = vector.load %arg4[%c0_51, %c0_52, %c0_53] : memref<1x1x256xf32, #tpu.memory_space<vmem>>, vector<1x1x256xf32>
      tpu.vector_store %arg4[%c0_51, %c0_52, %c0_53], %592 {strides = array<i32>} : memref<1x1x256xf32, #tpu.memory_space<vmem>>, vector<1x1x256xf32>,
    } else {
    }
    return
  }
  func.func @transform_0(%arg0: i32, %arg1: i32, %arg2: memref<98xf32, #tpu.memory_space<smem>>) -> (i32, i32, i32) {
    %c0_i32 = arith.constant 0 : i32
    %c0_i32_0 = arith.constant 0 : i32
    return %arg0, %arg1, %c0_i32 : i32, i32, i32
  }
  func.func @transform_1(%arg0: i32, %arg1: i32, %arg2: memref<98xf32, #tpu.memory_space<smem>>) -> (i32, i32, i32) {
    %c0_i32 = arith.constant 0 : i32
    %c0_i32_0 = arith.constant 0 : i32
    %c0_i32_1 = arith.constant 0 : i32
    return %arg0, %c0_i32, %c0_i32_0 : i32, i32, i32
  }
}

</mosaic_0001>

<bundles_post_ra>
// kernel: tpu_custom_call.1
= control target key start
LH: loop header
LB: loop body
LE: loop exit
PB: predicated region body
PF: predicated region fallthrough
CT: control target
= control target key end

     0   :  { %s2243_s9 = smov [#allocation5]   ;;  %s3218_s0 = inlined_call_operand.hbm [shape: f32[98], index: 0, kind: input, shape index: {}]   ;;  %s3219_s1 = inlined_call_operand.hbm [shape: f32[2,4,256], index: 1, kind: input, shape index: {}]   ;;  %s3220_s2 = inlined_call_operand.hbm [shape: f32[2,1,256], index: 2, kind: output, shape index: {}]  }
   0x1   :  { %8 = dma.hbm_to_smem %s3218_s0, 16, %s2243_s9, [#allocation4] }
   0x2   :  { %2209 = dma.done.wait [#allocation4], 16 }
   0x3   :  { %2210 = vsyncadd [#allocation4], 4294967280 }
   0x4   :  { %10 = sfence }
   0x5   :  { %11 = vsyncpa [#allocation7], 0 }
   0x6   :  { %13 = vsyncpa [#allocation7 + $0x1], 0 }
   0x7   :  { %14 = vsyncpa [#allocation8], 0 }
   0x8   :  { %16 = vsyncpa [#allocation8 + $0x1], 0  ;;  %s2315_s12 = smov 0   ;;  %s2317_s13 = smov 0  }
   0x9   :  { %s2319_s14 = smov 0   ;;  %s2321_s15 = smov 0  }
   0xa   :  { %s2323_s16 = smov 0   ;;  %s2325_s17 = smov 0  }
   0xb LB: > { %s1871_s0 = sadd.s32 4294967295, %s2241_s17   ;;  %s1872_s18 = sadd.s32 4294967294, %s2241_s17   ;;  %s2241_s17 = sphi %s2325_s17, %s22_s17   ;;  %s2237_s16 = sphi %s2323_s16, %s3234_s16   ;;  %s2233_s15 = sphi %s2321_s15, %s3233_s15   ;;  %s2229_s14 = sphi %s2319_s14, %s3232_s14   ;;  %s2225_s13 = sphi %s2317_s13, %s3231_s13   ;;  %s2221_s12 = sphi %s2315_s12, %s3230_s12  }
   0xc   : > { %s34_s19 = sadd.s32 1, %s2237_s16  ;;  %s43_s20 = sadd.s32 1, %s2229_s14 }
   0xd   : > { %p36_p0 = scmp.ge.s32.totalorder %s34_s19, 2  ;;  %p50_p1 = scmp.ne.s32.totalorder %s2229_s14, %s2225_s13 }
   0xe   : > { %p51_p2 = scmp.eq.s32.totalorder %s2241_s17, 0  ;;  %p56_p3 = scmp.ne.s32.totalorder %s2225_s13, %s2221_s12 }
   0xf   : > { %s3236_s19 = smov (%p36_p0, %s34_s19), 0  ;;  %p57_p5 = scmp.eq.s32.totalorder %s1871_s0, 0 }
  0x10   : > { %p2356_p4 = por %p51_p2, %p50_p1  ;;  %s38_s22 = ssub.s32 %s2237_s16, %s3236_s19 }
  0x11   : > { %p80_p6 = scmp.eq.s32.totalorder %s1871_s0, 1  ;;  %p41_p7 = scmp.eq.s32.totalorder %s38_s22, 0 }
  0x12   : > { %p2362_p8 = por %p57_p5, %p56_p3  ;;  %p86_p10 = scmp.eq.s32.totalorder %s1872_s18, 1 }
  0x13   : > { %p2366_p9 = por %p80_p6, %p50_p1  ;;  %p2011_p13 = scmp.lt.s32.totalorder %s2241_s17, 2 }
  0x14   : > { %s2371_s25 = scalar_select %p41_p7, %s2229_s14, %s43_s20  }
  0x15   : > { %p2373_p11 = por %p86_p10, %p56_p3  ;;  %s106_s27 = sand.u32 1, %s2229_s14  }
  0x16   : > { %s1875_s28 = sshll.u32 %s106_s27, 3  ;;  %s1997_s29 = sshll.u32 %s2237_s16, 7 }
  0x17   : > { %s3224_s26 = scalar_select %p2373_p11, 1, 0 }
  0x18   : > { %s118_s4 = scalar_lea.hbm %s3219_s1, %s1997_s29  ;;  %s110_s5 = scalar_lea.vmem [#allocation6], %s1875_s28 }
  0x19   : > { %s120_s6 = sshll.u32 %s110_s5, 4  ;;  %p2386_p0 = pnand %p2011_p13, %p2356_p4  ;;  %s121_s6 = int_to_ptr.vmem [resolvable:$true] %s120_s6 }
  0x1a   : > { %p1878_p1 = scmp.ge.s32.totalorder %s2241_s17, 1  ;;  %p125_p2 = scmp.lt.s32.totalorder %s2241_s17, 3 }
  0x1b   : > { %s107_s8 = scalar_lea.sflag [#allocation7], %s106_s27  ;;  %p2133_p3 = pneg %p2386_p0 }
  0x1c   : > { %s2144_s9 = scalar_lea.vmem %s121_s6, 128  ;;  %s2244_s10 = smov [#allocation6]  }
  0x1d   : > { %p2145_p5 = scmp.ne.s32.totalorder %s121_s6, %s2144_s9  ;;  %s2149_s11 = sshll.u32 %s2244_s10, 4  ;;  %s2150_s11 = int_to_ptr.vmem [resolvable:$false] %s2149_s11 }
  0x1e   : > { %s2151_s0 = scalar_lea.vmem %s2150_s11, 256  ;;  %p2152_p10 = scmp.lt.s32.totalorder %s121_s6, %s2150_s11 }
  0x1f   : > { %p2147_p6 = pnand %p2145_p5, %p2133_p3  ;;  %p2153_p12 = scmp.lt.s32.totalorder %s2151_s0, %s2144_s9 }
  0x21   : > { %p2148_p7 = pneg %p2147_p6  ;;  %p2154_p4 = por %p2153_p12, %p2152_p10 }
  0x23   : > { %p2155_p13 = pnand %p2154_p4, %p2148_p7 }
  0x25   : > { %2158 = shalt.err (!%p2155_p13)
}
  0x26   : > { %2006 = dma.hbm_to_vmem [thread:$0]  (!%p2386_p0), %s118_s4, 128, %s121_s6, %s107_s8  }
  0x27   : > { %p126_p11 = pnand %p1878_p1, %p125_p2 }
  0x28   : > { %s2401_s18 = sand.u32 (!%p126_p11), 1, %s2225_s13  }
  0x29   : > { %129 = sbr.rel (%p126_p11) target bundleno = 452 (0x1c4), region = 24  ;;  %s1879_s20 = sshll.u32 (!%p126_p11), %s2401_s18, 3 }
  0x2a   : > { %s132_s21 = scalar_lea.sflag (!%p126_p11), [#allocation7], %s2401_s18  ;;  %s135_s22 = scalar_lea.vmem (!%p126_p11), [#allocation6], %s1879_s20 }
  0x2e   : > { %2212 = dma.done.wait (%p2362_p8), %s132_s21, 128  }
  0x2f   : > { %2214 = vsyncadd (%p2362_p8), %s132_s21, 4294967168  ;;  %v158_v0 = vlaneseq  ;;  %v2245_v2 = vmov 0.0   ;;  %v2246_v3 = vmov -inf   ;;  %vm169_vm1 = vcmask 1043456   ;;  %v164_v4 = vld [vmem:[%s135_s22] sm:$0xff]  ;;  %s1930_s23 = sld [smem:[#allocation5 + $0x32]] }
  0x30   : > { %v167_v5 = vcombine.high %v164_v4, %v164_v4  ;;  %v170_v6 = vsel %vm169_vm1, %v164_v4, 0.0  ;;  %v209_v7 = vsel %vm169_vm1, %v164_v4, -inf  ;;  %v2247_v16 = vmov 1966171168   ;;  %s1929_s27 = sld [smem:[#allocation5 + $0x31]]  ;;  %s2248_s11 = smov 50  }
  0x31   : > { %vm2410_vm0 = vcmp.lt.s32.totalorder %v158_v0, 256  ;;  %v171_v8 = vrot.slane %v170_v6, 4  ;;  %v210_v9 = vrot.slane %v209_v7, 4  ;;  %v188_v17 = vunpack.c.l.s4 %v2247_v16  ;;  %s1881_s28 = sld [smem:[#allocation5 + $0x1]]  ;;  %s2249_s0 = smov 51  }
  0x32   : > { %162 = vst.msk [vmem:[#allocation2] sm:$0x3] %vm2410_vm0, %v2245_v2  ;;  %163 = vst.msk [vmem:[#allocation3] sm:$0x3] %vm2410_vm0, %v2246_v3  ;;  %v177_v10 = vsel %vm169_vm1, %v167_v5, 0.0  ;;  %v216_v11 = vsel %vm169_vm1, %v167_v5, -inf }
  0x33   : > { %v172_v12 = vadd.f32 %v171_v8, %v170_v6  ;;  %v178_v13 = vrot.slane %v177_v10, 4  ;;  %v211_v14 = vmax.f32 %v209_v7, %v210_v9  ;;  %v217_v15 = vrot.slane %v216_v11, 4  ;;  %s249_s29 = sld [smem:[#allocation5]] }
  0x34   : > { %v189_v26 = vunpack.c.0.s8 %v188_v17  ;;  %v191_v27 = vshrl.u32 %v158_v0, 7  ;;  %s1882_s30 = sld [smem:[#allocation5 + $0x2]] }
  0x35   : > { %v173_v18 = vrot.slane %v172_v12, 2  ;;  %v179_v19 = vadd.f32 %v178_v13, %v177_v10  ;;  %v212_v20 = vrot.slane %v211_v14, 2  ;;  %v218_v21 = vmax.f32 %v216_v11, %v217_v15  ;;  %s1931_s3 = sld [smem:[#allocation5 + $0x33]] }
  0x36   : > { %v2420_v37 = vsub.s32 %v189_v26, %v191_v27  ;;  %s1883_s4 = sld [smem:[#allocation5 + $0x3]]  ;;  %v431_v49 = vstv %s1930_s23  ;;  %v406_v50 = vstv %s1929_s27  ;;  %v2440_v60 = vsub.s32 0, %v191_v27  ;;  %s2250_s23 = smov 49  }
  0x37   : > { %v174_v22 = vadd.f32 %v173_v18, %v172_v12  ;;  %v180_v23 = vrot.slane %v179_v19, 2  ;;  %v213_v24 = vmax.f32 %v211_v14, %v212_v20  ;;  %v219_v25 = vrot.slane %v218_v21, 2  ;;  %s1932_s5 = sld [smem:[#allocation5 + $0x34]] }
  0x38   : > { %v429_v53 = vstv %s1881_s28  ;;  %s2432_s6 = sld [smem:[#allocation5 + $0x4]]  ;;  %v2444_v63 = vsub.s32 1, %v191_v27 }
  0x39   : > { %v175_v28 = vrot.slane %v174_v22, 1  ;;  %v181_v29 = vadd.f32 %v180_v23, %v179_v19  ;;  %v214_v30 = vrot.slane %v213_v24, 1  ;;  %v220_v31 = vmax.f32 %v218_v21, %v219_v25  ;;  %v165_v43 = vld [vmem:[#allocation2] sm:$0x3]  ;;  %v208_v44 = vld [vmem:[#allocation3] sm:$0x3] }
  0x3a   : > { %v404_v54 = vstv %s249_s29  ;;  %s2438_s7 = sld [smem:[#allocation5 + $0x35]]  ;;  %v456_v58 = vstv %s1882_s30  ;;  %s2251_s30 = smov 48  }
  0x3b   : > { %v176_v32 = vadd.f32 %v175_v28, %v174_v22  ;;  %v182_v33 = vrot.slane %v181_v29, 1  ;;  %v215_v34 = vmax.f32 %v213_v24, %v214_v30  ;;  %v221_v35 = vrot.slane %v220_v31, 1  ;;  %s2446_s8 = sld [smem:[#allocation5 + $0x5]] }
  0x3c   : > { %v458_v59 = vstv %s1931_s3  ;;  %v483_v3 = vstv %s1883_s4  ;;  %s1934_s9 = sld [smem:[#allocation5 + $0x36]] }
  0x3d   : > { %v183_v36 = vadd.f32 %v182_v33, %v181_v29  ;;  %v222_v38 = vmax.f32 %v220_v31, %v221_v35  ;;  %v485_v4 = vstv %s1932_s5  ;;  %s2455_s10 = sld [smem:[#allocation5 + $0x6]]  ;;  %s2252_s5 = smov 47  }
  0x3e   : > { %v508_v13 = vstv %s2432_s6  ;;  %s1935_s20 = sld [smem:[#allocation5 + $0x37]] }
  0x3f   : > { %v186_v39 = vcombine.low %v176_v32, %v183_v36  ;;  %v225_v40 = vcombine.low %v215_v34, %v222_v38  ;;  %s1887_s21 = sld [smem:[#allocation5 + $0x7]] }
  0x40   : > { %v510_v17 = vstv %s2438_s7  ;;  %s2465_s22 = sld [smem:[#allocation5 + $0x38]]  ;;  %s2253_s7 = smov 46  }
  0x41   : > { %v193_v41 = vrot.slane %v186_v39, %v2420_v37  ;;  %v232_v42 = vrot.slane %v225_v40, %v2420_v37  ;;  %v535_v20 = vstv %s2446_s8  ;;  %s2472_s27 = sld [smem:[#allocation5 + $0x8]] }
  0x42   : > { %v537_v24 = vstv %s1934_s9  ;;  %s2474_s28 = sld [smem:[#allocation5 + $0x39]] }
  0x43   : > { %v200_v45 = vrot.slane %v193_v41, %v2420_v37  ;;  %v239_v46 = vrot.slane %v232_v42, %v2420_v37  ;;  %v562_v27 = vstv %s2455_s10  ;;  %s2478_s29 = sld [smem:[#allocation5 + $0x9]] }
  0x44   : > { %v564_v31 = vstv %s1935_s20  ;;  %s1938_s3 = sld [smem:[#allocation5 + $0x3a]]  ;;  %s2255_s20 = smov 35  }
  0x45   : > { %v202_v47 = vadd.f32 %v200_v45, %v165_v43  ;;  %v241_v48 = vmax.f32 %v208_v44, %v239_v46  ;;  %v597_v38 = vstv %s1887_s21  ;;  %s2484_s4 = sld [smem:[#allocation5 + $0xa]] }
  0x46   : > { %v599_v39 = vstv %s2465_s22  ;;  %s1939_s6 = sld [smem:[#allocation5 + $0x3b]] }
  0x47   : > { %207 = vst.msk [vmem:[#allocation2] sm:$0x3] %vm2410_vm0, %v202_v47  ;;  %242 = vst.msk [vmem:[#allocation3] sm:$0x3] %vm2410_vm0, %v241_v48  ;;  %v622_v45 = vstv %s2472_s27  ;;  %s1891_s8 = sld [smem:[#allocation5 + $0xb]] }
  0x48   : > { %v624_v46 = vstv %s2474_s28  ;;  %s2496_s9 = sld [smem:[#allocation5 + $0x3c]] }
  0x49   : > { %s2501_s10 = sld [smem:[#allocation5 + $0xc]] }
  0x4a   : > { %s1893_s21 = sld [smem:[#allocation5 + $0xd]] }
  0x4b   : > { %s2510_s22 = sld [smem:[#allocation5 + $0x3e]] }
  0x4c   : > { %s1894_s27 = sld [smem:[#allocation5 + $0xe]] }
  0x4d   : > { %s2517_s28 = sld [smem:[#allocation5 + $0x3f]] }
  0x4e   : > { %v246_v51 = vld [vmem:[#allocation2] sm:$0x3]  ;;  %v2430_v52 = vld [vmem:[#allocation3] sm:$0x3] }
  0x4f   : > { %v2434_v55 = vmul.f32 0.25, %v246_v51  ;;  %v432_v56 = vmul.f32 %v431_v49, %v2430_v52  ;;  %v407_v57 = vmul.f32 %v406_v50, %v2430_v52  ;;  %v459_v8 = vmul.f32 %v458_v59, %v2430_v52 }
  0x50   : > { %v486_v12 = vmul.f32 %v485_v4, %v2430_v52  ;;  %v511_v19 = vmul.f32 %v510_v17, %v2430_v52  ;;  %v538_v26 = vmul.f32 %v537_v24, %v2430_v52  ;;  %v565_v33 = vmul.f32 %v564_v31, %v2430_v52 }
  0x51   : > { %v430_v61 = vmul.f32 %v429_v53, %v2434_v55  ;;  %v405_v62 = vmul.f32 %v404_v54, %v2434_v55  ;;  %v457_v7 = vmul.f32 %v456_v58, %v2434_v55  ;;  %v484_v11 = vmul.f32 %v483_v3, %v2434_v55 }
  0x52   : > { %v509_v18 = vmul.f32 %v508_v13, %v2434_v55  ;;  %v536_v25 = vmul.f32 %v535_v20, %v2434_v55  ;;  %v563_v32 = vmul.f32 %v562_v27, %v2434_v55  ;;  %v598_v41 = vmul.f32 %v597_v38, %v2434_v55 }
  0x53   : > { %v433_v5 = vadd.f32 %v432_v56, %v430_v61  ;;  %v408_v6 = vadd.f32 %v407_v57, %v405_v62  ;;  %v460_v16 = vadd.f32 %v459_v8, %v457_v7  ;;  %v487_v23 = vadd.f32 %v486_v12, %v484_v11 }
  0x54   : > { %v512_v30 = vadd.f32 %v511_v19, %v509_v18  ;;  %v539_v36 = vadd.f32 %v538_v26, %v536_v25  ;;  %v566_v40 = vadd.f32 %v565_v33, %v563_v32  ;;  %v600_v44 = vmul.f32 %v599_v39, %v2430_v52 }
  0x55   : > { %v438_v9 = vrot.slane %v433_v5, %v2440_v60  ;;  %v413_v10 = vrot.slane %v408_v6, %v2440_v60  ;;  %v442_v14 = vrot.slane %v433_v5, %v2444_v63  ;;  %v417_v15 = vrot.slane %v408_v6, %v2444_v63 }
  0x56   : > { %v469_v21 = vrot.slane %v460_v16, %v2444_v63  ;;  %v465_v22 = vrot.slane %v460_v16, %v2440_v60  ;;  %v496_v28 = vrot.slane %v487_v23, %v2444_v63  ;;  %v492_v29 = vrot.slane %v487_v23, %v2440_v60 }
  0x57   : > { %445 = vrot.lane.b32.xlu1 %v438_v9, %s2248_s11  ;;  %420 = vrot.lane.b32.xlu0 %v413_v10, %s2249_s0  ;;  %v521_v34 = vrot.slane %v512_v30, %v2444_v63  ;;  %v517_v35 = vrot.slane %v512_v30, %v2440_v60  ;;  %v548_v42 = vrot.slane %v539_v36, %v2444_v63  ;;  %v649_v49 = vstv %s2478_s29  ;;  %s2521_s29 = sld [smem:[#allocation5 + $0xf]] }
  0x58   : > { %v544_v43 = vrot.slane %v539_v36, %v2440_v60  ;;  %v575_v47 = vrot.slane %v566_v40, %v2444_v63  ;;  %v571_v48 = vrot.slane %v566_v40, %v2440_v60  ;;  %v601_v50 = vadd.f32 %v600_v44, %v598_v41 }
  0x59   : > { %v623_v51 = vmul.f32 %v622_v45, %v2434_v55  ;;  %v625_v53 = vmul.f32 %v624_v46, %v2430_v52  ;;  %v651_v54 = vstv %s1938_s3  ;;  %v650_v56 = vmul.f32 %v649_v49, %v2434_v55  ;;  %s1944_s3 = sld [smem:[#allocation5 + $0x40]] }
  0x5a   : > { %v652_v57 = vmul.f32 %v651_v54, %v2430_v52  ;;  %v676_v58 = vstv %s2484_s4  ;;  %v610_v59 = vrot.slane %v601_v50, %v2444_v63  ;;  %v606_v61 = vrot.slane %v601_v50, %v2440_v60  ;;  %s2527_s4 = sld [smem:[#allocation5 + $0x10]] }
  0x5b   : > { %447 = vrot.lane.b32.xlu1 %v442_v14, %s2248_s11  ;;  %422 = vrot.lane.b32.xlu0 %v417_v15, %s2249_s0  ;;  %s2254_s11 = smov 45   ;;  %v626_v62 = vadd.f32 %v625_v53, %v623_v51  ;;  %v678_v3 = vstv %s1939_s6  ;;  %s1941_s0 = sld [smem:[#allocation5 + $0x3d]]  ;;  %v677_v4 = vmul.f32 %v676_v58, %v2434_v55  ;;  %v701_v9 = vstv %s1891_s8 }
  0x5c   : > { %v679_v5 = vmul.f32 %v678_v3, %v2430_v52  ;;  %v653_v8 = vadd.f32 %v652_v57, %v650_v56  ;;  %v703_v10 = vstv %s2496_s9  ;;  %v702_v12 = vmul.f32 %v701_v9, %v2434_v55  ;;  %s1945_s6 = sld [smem:[#allocation5 + $0x41]]  ;;  %s2259_s8 = smov 31  }
  0x5d   : > { %v635_v6 = vrot.slane %v626_v62, %v2444_v63  ;;  %v631_v7 = vrot.slane %v626_v62, %v2440_v60  ;;  %v728_v13 = vstv %s2501_s10  ;;  %v704_v16 = vmul.f32 %v703_v10, %v2430_v52  ;;  %s1946_s9 = sld [smem:[#allocation5 + $0x42]] }
  0x5e   : > { %v680_v11 = vadd.f32 %v679_v5, %v677_v4  ;;  %v662_v14 = vrot.slane %v653_v8, %v2444_v63  ;;  %v658_v15 = vrot.slane %v653_v8, %v2440_v60  ;;  %v729_v18 = vmul.f32 %v728_v13, %v2434_v55  ;;  %s2540_s10 = sld [smem:[#allocation5 + $0x1c]] }
  0x5f   : > { %474 = vrot.lane.b32.xlu1 %v469_v21, %s2250_s23  ;;  %472 = vrot.lane.b32.xlu0 %v465_v22, %s2250_s23  ;;  %s2256_s23 = smov 34   ;;  %v705_v22 = vadd.f32 %v704_v16, %v702_v12  ;;  %v755_v23 = vstv %s1893_s21  ;;  %v757_v24 = vstv %s2510_s22  ;;  %s2551_s21 = sld [smem:[#allocation5 + $0x43]] }
  0x60   : > { %v689_v20 = vrot.slane %v680_v11, %v2444_v63  ;;  %v685_v21 = vrot.slane %v680_v11, %v2440_v60  ;;  %v756_v26 = vmul.f32 %v755_v23, %v2434_v55  ;;  %v788_v30 = vstv %s1894_s27  ;;  %s2261_s22 = smov 29   ;;  %s2560_s27 = sld [smem:[#allocation5 + $0x4e]] }
  0x61   : > { %v730_v17 = vstv %s1941_s0  ;;  %v714_v27 = vrot.slane %v705_v22, %v2444_v63  ;;  %v790_v31 = vstv %s2517_s28  ;;  %v789_v33 = vmul.f32 %v788_v30, %v2434_v55  ;;  %s2260_s0 = smov 30   ;;  %s2262_s28 = smov 19  }
  0x62   : > { %v731_v19 = vmul.f32 %v730_v17, %v2430_v52  ;;  %v791_v38 = vmul.f32 %v790_v31, %v2430_v52  ;;  %v815_v39 = vstv %s1944_s3  ;;  %v842_v46 = vstv %s1945_s6  ;;  %s2263_s3 = smov 18   ;;  %s2264_s6 = smov 17  }
  0x63   : > { %501 = vrot.lane.b32.xlu1 %v496_v28, %s2251_s30  ;;  %499 = vrot.lane.b32.xlu0 %v492_v29, %s2251_s30  ;;  %s2257_s30 = smov 33   ;;  %v710_v28 = vrot.slane %v705_v22, %v2440_v60  ;;  %v758_v29 = vmul.f32 %v757_v24, %v2430_v52  ;;  %v816_v41 = vmul.f32 %v815_v39, %v2430_v52  ;;  %v869_v54 = vstv %s1946_s9  ;;  %s2596_s9 = sld [smem:[#allocation5 + $0x2b]] }
  0x64   : > { %v732_v25 = vadd.f32 %v731_v19, %v729_v18  ;;  %v792_v45 = vadd.f32 %v791_v38, %v789_v33  ;;  %v870_v58 = vmul.f32 %v869_v54, %v2430_v52  ;;  %v1157_v62 = vstv %s2540_s10  ;;  %s2265_s10 = smov 16  }
  0x65   : > { %v759_v36 = vadd.f32 %v758_v29, %v756_v26  ;;  %v894_v5 = vstv %s2551_s21  ;;  %v1158_v8 = vmul.f32 %v1157_v62, %v2434_v55  ;;  %s2607_s21 = sld [smem:[#allocation5 + $0x1e]] }
  0x66   : > { %v741_v32 = vrot.slane %v732_v25, %v2444_v63  ;;  %v801_v50 = vrot.slane %v792_v45, %v2444_v63  ;;  %v797_v51 = vrot.slane %v792_v45, %v2440_v60  ;;  %v895_v12 = vmul.f32 %v894_v5, %v2430_v52 }
  0x67   : > { %526 = vrot.lane.b32.xlu1 %v521_v34, %s2252_s5  ;;  %524 = vrot.lane.b32.xlu0 %v517_v35, %s2252_s5  ;;  %s2258_s5 = smov 32   ;;  %v813_v34 = vstv %s2521_s29  ;;  %v737_v35 = vrot.slane %v732_v25, %v2440_v60  ;;  %v764_v44 = vrot.slane %v759_v36, %v2440_v60  ;;  %s2568_s29 = sld [smem:[#allocation5 + $0x23]] }
  0x68   : > { %v814_v40 = vmul.f32 %v813_v34, %v2434_v55 }
  0x6a   : > { %v817_v53 = vadd.f32 %v816_v41, %v814_v40  ;;  %v1570_v40 = vstv %s2596_s9  ;;  %s2642_s9 = sld [smem:[#allocation5 + $0x47]] }
  0x6b   : > { %553 = vrot.lane.b32.xlu1 %v548_v42, %s2253_s7  ;;  %551 = vrot.lane.b32.xlu0 %v544_v43, %s2253_s7  ;;  %s2536_s7 = sld [smem:[#allocation5 + $0x11]]  ;;  %v840_v42 = vstv %s2527_s4  ;;  %v768_v43 = vrot.slane %v759_v36, %v2444_v63  ;;  %v1571_v45 = vmul.f32 %v1570_v40, %v2434_v55 }
  0x6c   : > { %s1916_s4 = sld [smem:[#allocation5 + $0x24]] }
  0x6f   : > { %580 = vrot.lane.b32.xlu1 %v575_v47, %s2254_s11  ;;  %578 = vrot.lane.b32.xlu0 %v571_v48, %s2254_s11  ;;  %s2545_s11 = sld [smem:[#allocation5 + $0x4d]]  ;;  %v841_v47 = vmul.f32 %v840_v42, %v2434_v55  ;;  %v843_v48 = vmul.f32 %v842_v46, %v2430_v52 }
  0x71   : > { %v867_v49 = vstv %s2536_s7  ;;  %v844_v56 = vadd.f32 %v843_v48, %v841_v47  ;;  %s1922_s7 = sld [smem:[#allocation5 + $0x2a]] }
  0x72   : > { %v868_v57 = vmul.f32 %v867_v49, %v2434_v55 }
  0x73   : > { %615 = vrot.lane.b32.xlu1 %v610_v59, %s2255_s20  ;;  %613 = vrot.lane.b32.xlu0 %v606_v61, %s2255_s20  ;;  %s2549_s20 = sld [smem:[#allocation5 + $0x12]]  ;;  %v826_v59 = vrot.slane %v817_v53, %v2444_v63  ;;  %v822_v61 = vrot.slane %v817_v53, %v2440_v60  ;;  %v849_v10 = vrot.slane %v844_v56, %v2440_v60 }
  0x75   : > { %v1159_v3 = vstv %s2545_s11  ;;  %s1972_s11 = sld [smem:[#allocation5 + $0x5c]] }
  0x76   : > { %v1160_v9 = vmul.f32 %v1159_v3, %v2430_v52 }
  0x77   : > { %640 = vrot.lane.b32.xlu1 %v635_v6, %s2256_s23  ;;  %638 = vrot.lane.b32.xlu0 %v631_v7, %s2256_s23  ;;  %s2558_s23 = sld [smem:[#allocation5 + $0x1d]]  ;;  %v853_v6 = vrot.slane %v844_v56, %v2444_v63  ;;  %v871_v7 = vadd.f32 %v870_v58, %v868_v57 }
  0x78   : > { %v1161_v17 = vadd.f32 %v1160_v9, %v1158_v8 }
  0x79   : > { %v892_v4 = vstv %s2549_s20  ;;  %v876_v16 = vrot.slane %v871_v7, %v2440_v60  ;;  %s2267_s20 = smov 15  }
  0x7a   : > { %v893_v11 = vmul.f32 %v892_v4, %v2434_v55  ;;  %v1166_v23 = vrot.slane %v1161_v17, %v2440_v60  ;;  %v1170_v30 = vrot.slane %v1161_v17, %v2444_v63 }
  0x7b   : > { %667 = vrot.lane.b32.xlu1 %v662_v14, %s2257_s30  ;;  %665 = vrot.lane.b32.xlu0 %v658_v15, %s2257_s30  ;;  %s2572_s30 = sld [smem:[#allocation5 + $0x54]]  ;;  %v1184_v14 = vstv %s2560_s27  ;;  %v880_v15 = vrot.slane %v871_v7, %v2444_v63  ;;  %s2268_s27 = smov 114  }
  0x7c   : > { %v2586_v18 = vadd.f32 %v895_v12, %v893_v11 }
  0x7d   : > { %v1182_v13 = vstv %s2558_s23  ;;  %s2615_s23 = sld [smem:[#allocation5 + $0x25]] }
  0x7e   : > { %v1183_v19 = vmul.f32 %v1182_v13, %v2434_v55  ;;  %v901_v25 = vrot.slane %v2586_v18, %v2440_v60 }
  0x7f   : > { %694 = vrot.lane.b32.xlu1 %v689_v20, %s2258_s5  ;;  %692 = vrot.lane.b32.xlu0 %v685_v21, %s2258_s5  ;;  %s2582_s5 = sld [smem:[#allocation5 + $0x55]]  ;;  %v1185_v20 = vmul.f32 %v1184_v14, %v2430_v52  ;;  %v1352_v21 = vstv %s2568_s29  ;;  %s2269_s29 = smov 99  }
  0x80   : > { %v1353_v24 = vmul.f32 %v1352_v21, %v2434_v55 }
  0x81   : > { %v1354_v22 = vstv %s2572_s30  ;;  %v1186_v26 = vadd.f32 %v1185_v20, %v1183_v19  ;;  %s2623_s30 = sld [smem:[#allocation5 + $0x2c]] }
  0x83   : > { %719 = vrot.lane.b32.xlu1 %v714_v27, %s2259_s8  ;;  %717 = vrot.lane.b32.xlu0 %v710_v28, %s2259_s8  ;;  %s2592_s8 = sld [smem:[#allocation5 + $0x5b]]  ;;  %v1355_v27 = vmul.f32 %v1354_v22, %v2430_v52  ;;  %v1377_v28 = vstv %s1916_s4  ;;  %v1195_v38 = vrot.slane %v1186_v26, %v2444_v63  ;;  %v1404_v56 = vstv %s2615_s23  ;;  %s2270_s4 = smov 98  }
  0x84   : > { %v1378_v31 = vmul.f32 %v1377_v28, %v2434_v55  ;;  %v1405_v62 = vmul.f32 %v1404_v56, %v2434_v55  ;;  %s2658_s23 = sld [smem:[#allocation5 + $0x50]] }
  0x85   : > { %v1379_v29 = vstv %s2582_s5  ;;  %v1356_v33 = vadd.f32 %v1355_v27, %v1353_v24  ;;  %s1901_s5 = sld [smem:[#allocation5 + $0x15]]  ;;  %v2661_v24 = vand.u32 127, %v158_v0 }
  0x86   : > { %v1380_v34 = vmul.f32 %v1379_v29, %v2430_v52 }
  0x87   : > { %746 = vrot.lane.b32.xlu1 %v741_v32, %s2260_s0  ;;  %744 = vrot.lane.b32.xlu0 %v737_v35, %s2260_s0  ;;  %s2266_s0 = smov 115   ;;  %v1191_v32 = vrot.slane %v1186_v26, %v2440_v60  ;;  %v1545_v35 = vstv %s1922_s7  ;;  %v1361_v41 = vrot.slane %v1356_v33, %v2440_v60  ;;  %v1365_v48 = vrot.slane %v1356_v33, %v2444_v63  ;;  %s2271_s7 = smov 83  }
  0x88   : > { %v1546_v39 = vmul.f32 %v1545_v35, %v2434_v55  ;;  %v1381_v42 = vadd.f32 %v1380_v34, %v1378_v31  ;;  %v1597_v7 = vstv %s2623_s30  ;;  %v2675_v33 = vadd.s32 128, %v2661_v24  ;;  %s2275_s30 = smov 81  }
  0x89   : > { %v1547_v36 = vstv %s2592_s8  ;;  %s1902_s8 = sld [smem:[#allocation5 + $0x16]]  ;;  %v1598_v12 = vmul.f32 %v1597_v7, %v2434_v55  ;;  %v2684_v40 = vand.u32 15, %v2661_v24  ;;  %vm449_vm7 = vcmp.lt.s32.totalorder %v2661_v24, 50 }
  0x8a   : > { %v1386_v47 = vrot.slane %v1381_v42, %v2440_v60  ;;  %v1390_v53 = vrot.slane %v1381_v42, %v2444_v63  ;;  %vm424_vm8 = vcmp.lt.s32.totalorder %v2661_v24, 51  ;;  %vm476_vm10 = vcmp.lt.s32.totalorder %v2661_v24, 49 }
  0x8b   : > { %773 = vrot.lane.b32.xlu1 %v768_v43, %s2261_s22  ;;  %771 = vrot.lane.b32.xlu0 %v764_v44, %s2261_s22  ;;  %s2610_s22 = sld [smem:[#allocation5 + $0x4f]]  ;;  %v1548_v43 = vmul.f32 %v1547_v36, %v2430_v52  ;;  %v1572_v44 = vstv %s1972_s11  ;;  %v979_v14 = vstv %s1901_s5  ;;  %s2276_s5 = smov 3   ;;  %vm362_vm2 = vcmp.ge.s32.totalorder %v2684_v40, 2 }
  0x8c   : > { %v1573_v46 = vmul.f32 %v1572_v44, %v2430_v52  ;;  %s1903_s11 = sld [smem:[#allocation5 + $0x17]]  ;;  %v980_v17 = vmul.f32 %v979_v14, %v2434_v55  ;;  %vm352_vm4 = vcmp.ge.s32.totalorder %v2684_v40, 3  ;;  %vm370_vm6 = vcmp.ge.s32.totalorder %v2684_v40, 1 }
  0x8d   : > { %v1549_v49 = vadd.f32 %v1548_v43, %v1546_v39  ;;  %v1238_v39 = vstv %s2658_s23  ;;  %v2737_v7 = vsel %vm370_vm6, 1.0, %v2245_v2  ;;  %vm380_vm11 = vcmp.lt.s32.totalorder %v2684_v40, 15  ;;  %s2279_s23 = smov 112  }
  0x8e   : > { %v1574_v54 = vadd.f32 %v1573_v46, %v1571_v45  ;;  %v1239_v46 = vmul.f32 %v1238_v39, %v2430_v52  ;;  %vm503_vm12 = vcmp.lt.s32.totalorder %v2661_v24, 48  ;;  %vm528_vm14 = vcmp.lt.s32.totalorder %v2661_v24, 47 }
  0x8f   : > { %806 = vrot.lane.b32.xlu1 %v801_v50, %s2262_s28  ;;  %804 = vrot.lane.b32.xlu0 %v797_v51, %s2262_s28  ;;  %s1966_s28 = sld [smem:[#allocation5 + $0x56]]  ;;  %v1209_v50 = vstv %s2607_s21  ;;  %v1554_v57 = vrot.slane %v1549_v49, %v2440_v60  ;;  %v1558_v5 = vrot.slane %v1549_v49, %v2444_v63  ;;  %s2273_s21 = smov 113   ;;  %v1004_v22 = vstv %s1902_s8 }
  0x90   : > { %v1210_v58 = vmul.f32 %v1209_v50, %v2434_v55  ;;  %v1579_v4 = vrot.slane %v1574_v54, %v2440_v60  ;;  %v1583_v9 = vrot.slane %v1574_v54, %v2444_v63  ;;  %v1005_v26 = vmul.f32 %v1004_v22, %v2434_v55  ;;  %s2277_s8 = smov 2  }
  0x91   : > { %v1211_v51 = vstv %s2610_s22  ;;  %s2656_s22 = sld [smem:[#allocation5 + $0x1f]]  ;;  %vm388_vm15 = vcmp.lt.s32.totalorder %v2684_v40, 14  ;;  %vm589_vm6 = vcmp.ge.s32.totalorder %v2661_v24, 48 }
  0x93   : > { %831 = vrot.lane.b32.xlu1 %v826_v59, %s2263_s3  ;;  %829 = vrot.lane.b32.xlu0 %v822_v61, %s2263_s3  ;;  %s2627_s3 = sld [smem:[#allocation5 + $0x5d]]  ;;  %v1212_v59 = vmul.f32 %v1211_v51, %v2430_v52 }
  0x95   : > { %v1406_v61 = vstv %s1966_s28  ;;  %s2668_s28 = sld [smem:[#allocation5 + $0x20]] }
  0x96   : > { %v1407_v3 = vmul.f32 %v1406_v61, %v2430_v52  ;;  %v2722_v61 = vsel %vm352_vm4, 1.0, %v2245_v2 }
  0x97   : > { %858 = vrot.lane.b32.xlu1 %v853_v6, %s2264_s6  ;;  %856 = vrot.lane.b32.xlu0 %v849_v10, %s2264_s6  ;;  %s2634_s6 = sld [smem:[#allocation5 + $0x46]]  ;;  %v1213_v6 = vadd.f32 %v1212_v59, %v1210_v58  ;;  %v2713_v58 = vsel %vm362_vm2, 1.0, %v2245_v2  ;;  %vm555_vm2 = vcmp.lt.s32.totalorder %v2661_v24, 46 }
  0x98   : > { %v1408_v10 = vadd.f32 %v1407_v3, %v1405_v62 }
  0x99   : > { %v1599_v8 = vstv %s2627_s3  ;;  %v1218_v11 = vrot.slane %v1213_v6, %v2440_v60  ;;  %s2681_s3 = sld [smem:[#allocation5 + $0x26]] }
  0x9a   : > { %v1600_v13 = vmul.f32 %v1599_v8, %v2430_v52  ;;  %v1413_v19 = vrot.slane %v1408_v10, %v2440_v60 }
  0x9b   : > { %885 = vrot.lane.b32.xlu1 %v880_v15, %s2265_s10  ;;  %883 = vrot.lane.b32.xlu0 %v876_v16, %s2265_s10  ;;  %s2272_s10 = smov 82   ;;  %v1222_v16 = vrot.slane %v1213_v6, %v2444_v63 }
  0x9c   : > { %v1601_v20 = vadd.f32 %v1600_v13, %v1598_v12 }
  0x9d   : > { %v981_v15 = vstv %s2634_s6  ;;  %s2695_s6 = sld [smem:[#allocation5 + $0x27]] }
  0x9e   : > { %v982_v21 = vmul.f32 %v981_v15, %v2430_v52  ;;  %v1606_v27 = vrot.slane %v1601_v20, %v2440_v60  ;;  %v1610_v0 = vrot.slane %v1601_v20, %v2444_v63 }
  0x9f   : > { %1173 = vrot.lane.b32.xlu1 %v1166_v23, %s2266_s0  ;;  %908 = vrot.lane.b32.xlu0 %v901_v25, %s2267_s20  ;;  %v1006_v23 = vstv %s2642_s9  ;;  %v1417_v25 = vrot.slane %v1408_v10, %v2444_v63  ;;  %v1431_v3 = vstv %s2681_s3  ;;  %s2278_s9 = smov 1   ;;  %s2281_s3 = smov 96  }
  0xa0   : > { %v983_v28 = vadd.f32 %v982_v21, %v980_v17  ;;  %v1007_v29 = vmul.f32 %v1006_v23, %v2430_v52 }
  0xa2   : > { %v988_v34 = vrot.slane %v983_v28, %v2440_v60  ;;  %v1008_v35 = vadd.f32 %v1007_v29, %v1005_v26  ;;  %v992_v43 = vrot.slane %v983_v28, %v2444_v63 }
  0xa3   : > { %1198 = vrot.lane.b32.xlu1 %v1191_v32, %s2268_s27  ;;  %1175 = vrot.lane.b32.xlu0 %v1170_v30, %s2266_s0  ;;  %s2649_s0 = sld [smem:[#allocation5 + $0x48]]  ;;  %v1031_v30 = vstv %s1903_s11  ;;  %v1456_v13 = vstv %s2695_s6 }
  0xa4   : > { %v1032_v32 = vmul.f32 %v1031_v30, %v2434_v55  ;;  %v1013_v42 = vrot.slane %v1008_v35, %v2440_v60  ;;  %v1017_v50 = vrot.slane %v1008_v35, %v2444_v63  ;;  %s2747_s11 = sld [smem:[#allocation5 + $0x5e]]  ;;  %v1457_v35 = vmul.f32 %v1456_v13, %v2434_v55 }
  0xa5   : > { %s2864_s6 = sld [smem:[#allocation5 + $0x60]] }
  0xa7   : > { %1368 = vrot.lane.b32.xlu1 %v1361_v41, %s2269_s29  ;;  %1200 = vrot.lane.b32.xlu0 %v1195_v38, %s2268_s27  ;;  %s2274_s27 = smov 97   ;;  %v1236_v38 = vstv %s2656_s22  ;;  %v2687_v41 = vand.u32 15, %v2675_v33  ;;  %s2779_s22 = sld [smem:[#allocation5 + $0x13]] }
  0xa8   : > { %v1237_v45 = vmul.f32 %v1236_v38, %v2434_v55 }
  0xa9   : > { %v1033_v31 = vstv %s2649_s0  ;;  %vm363_vm3 = vcmp.ge.s32.totalorder %v2687_v41, 2  ;;  %vm353_vm5 = vcmp.ge.s32.totalorder %v2687_v41, 3  ;;  %vm371_vm9 = vcmp.ge.s32.totalorder %v2687_v41, 1  ;;  %s2761_s0 = sld [smem:[#allocation5 + $0x2e]] }
  0xaa   : > { %v1034_v36 = vmul.f32 %v1033_v31, %v2430_v52  ;;  %v2708_v51 = vadd.f32 %v1239_v46, %v1237_v45  ;;  %v2716_v59 = vsel %vm363_vm3, 1.0, %v2245_v2  ;;  %v2725_v62 = vsel %vm353_vm5, 1.0, %v2245_v2 }
  0xab   : > { %1393 = vrot.lane.b32.xlu1 %v1386_v47, %s2270_s4  ;;  %1370 = vrot.lane.b32.xlu0 %v1365_v48, %s2269_s29  ;;  %s2670_s29 = sld [smem:[#allocation5 + $0x51]]  ;;  %v1261_v47 = vstv %s2668_s28  ;;  %vm381_vm13 = vcmp.lt.s32.totalorder %v2687_v41, 15  ;;  %v2784_v31 = vsel %vm380_vm11, 1.0, %v2245_v2  ;;  %v1626_v45 = vstv %s2747_s11 }
  0xac   : > { %v1035_v44 = vadd.f32 %v1034_v36, %v1032_v32  ;;  %v1249_v8 = vrot.slane %v2708_v51, %v2444_v63  ;;  %v1245_v26 = vrot.slane %v2708_v51, %v2440_v60  ;;  %vm389_vm1 = vcmp.lt.s32.totalorder %v2687_v41, 14  ;;  %s2813_s28 = sld [smem:[#allocation5 + $0x52]] }
  0xad   : > { %v919_v13 = vstv %s2779_s22  ;;  %vm396_vm3 = vcmp.lt.s32.totalorder %v2684_v40, 13  ;;  %vm397_vm4 = vcmp.lt.s32.totalorder %v2687_v41, 13  ;;  %vm582_vm5 = vcmp.lt.s32.totalorder %v2661_v24, 45  ;;  %s2907_s11 = sld [smem:[#allocation5 + $0x14]] }
  0xae   : > { %v1040_v49 = vrot.slane %v1035_v44, %v2440_v60  ;;  %v1044_v6 = vrot.slane %v1035_v44, %v2444_v63  ;;  %s2928_s22 = sld [smem:[#allocation5 + $0x22]]  ;;  %vm721_vm11 = vcmp.lt.s32.totalorder %v2661_v24, 31 }
  0xaf   : > { %1561 = vrot.lane.b32.xlu1 %v1554_v57, %s2271_s7  ;;  %1395 = vrot.lane.b32.xlu0 %v1390_v53, %s2270_s4  ;;  %s2689_s4 = sld [smem:[#allocation5 + $0x57]]  ;;  %v1262_v53 = vmul.f32 %v1261_v47, %v2434_v55 }
  0xb1   : > { %v1263_v48 = vstv %s2670_s29  ;;  %s2280_s29 = smov 111  }
  0xb2   : > { %v1264_v54 = vmul.f32 %v1263_v48, %v2430_v52 }
  0xb3   : > { %1586 = vrot.lane.b32.xlu1 %v1579_v4, %s2272_s10  ;;  %1563 = vrot.lane.b32.xlu0 %v1558_v5, %s2271_s7  ;;  %s2699_s7 = sld [smem:[#allocation5 + $0x58]]  ;;  %v905_v5 = vrot.slane %v2586_v18, %v2444_v63 }
  0xb5   : > { %v1433_v4 = vstv %s2689_s4  ;;  %s2852_s4 = sld [smem:[#allocation5 + $0x59]] }
  0xb6   : > { %v1434_v12 = vmul.f32 %v1433_v4, %v2430_v52  ;;  %v1627_v4 = vmul.f32 %v1626_v45, %v2430_v52  ;;  %v2877_v45 = vsel %vm397_vm4, 1.0, %v2245_v2  ;;  %vm1177_vm4 = vcmp.lt.s32.totalorder %v2661_v24, 115 }
  0xb7   : > { %1225 = vrot.lane.b32.xlu1 %v1218_v11, %s2273_s21  ;;  %1588 = vrot.lane.b32.xlu0 %v1583_v9, %s2272_s10  ;;  %s2739_s10 = sld [smem:[#allocation5 + $0x2d]]  ;;  %v2744_v9 = vadd.f32 %v1264_v54, %v1262_v53  ;;  %v1432_v11 = vmul.f32 %v1431_v3, %v2434_v55 }
  0xb9   : > { %v1458_v14 = vstv %s2699_s7  ;;  %v1270_v44 = vrot.slane %v2744_v9, %v2440_v60  ;;  %s2282_s7 = smov 95  }
  0xba   : > { %v1459_v36 = vmul.f32 %v1458_v14, %v2430_v52 }
  0xbb   : > { %1420 = vrot.lane.b32.xlu1 %v1413_v19, %s2274_s27  ;;  %1227 = vrot.lane.b32.xlu0 %v1222_v16, %s2273_s21  ;;  %s2768_s21 = sld [smem:[#allocation5 + $0x5f]] }
  0xbc   : > { %v1460_v54 = vadd.f32 %v1459_v36, %v1457_v35 }
  0xbf   : > { %1613 = vrot.lane.b32.xlu1 %v1606_v27, %s2275_s30  ;;  %1422 = vrot.lane.b32.xlu0 %v1417_v25, %s2274_s27  ;;  %v2773_v25 = vsel %vm371_vm9, 1.0, %v2245_v2  ;;  %s2806_s27 = sld [smem:[#allocation5 + $0x21]]  ;;  %vm669_vm9 = vcmp.lt.s32.totalorder %v2661_v24, 33 }
  0xc3   : > { %995 = vrot.lane.b32.xlu1 %v988_v34, %s2276_s5  ;;  %1615 = vrot.lane.b32.xlu0 %v1610_v0, %s2275_s30  ;;  %v1435_v0 = vadd.f32 %v1434_v12, %v1432_v11  ;;  %v2832_v12 = vsel %vm389_vm1, 1.0, %v2245_v2  ;;  %s2843_s30 = sld [smem:[#allocation5 + $0x28]]  ;;  %vm833_vm1 = vcmp.lt.s32.totalorder %v2661_v24, 18 }
  0xc5   : > { %v1288_v36 = vstv %s2806_s27  ;;  %s2939_s27 = sld [smem:[#allocation5 + $0x29]] }
  0xc7   : > { %1020 = vrot.lane.b32.xlu1 %v1013_v42, %s2277_s8  ;;  %997 = vrot.lane.b32.xlu0 %v992_v43, %s2276_s5  ;;  %v1274_v42 = vrot.slane %v2744_v9, %v2444_v63  ;;  %v1624_v43 = vstv %s2739_s10  ;;  %v2826_v9 = vsel %vm388_vm15, 1.0, %v2245_v2  ;;  %s2856_s5 = sld [smem:[#allocation5 + $0x2f]]  ;;  %s2283_s10 = smov 80   ;;  %vm808_vm15 = vcmp.lt.s32.totalorder %v2661_v24, 19 }
  0xc9   : > { %v446_v56 = vpop.permute.xlu1 %445  ;;  %v421_v57 = vpop.permute.xlu0 %420 }
  0xcb   : > { %1047 = vrot.lane.b32.xlu1 %v1040_v49, %s2278_s9  ;;  %1022 = vrot.lane.b32.xlu0 %v1017_v50, %s2277_s8  ;;  %v1444_v50 = vrot.slane %v1435_v0, %v2444_v63  ;;  %s2884_s8 = sld [smem:[#allocation5 + $0x19]] }
  0xcd   : > { %v448_v18 = vpop.permute.xlu1 %447  ;;  %v423_v10 = vpop.permute.xlu0 %422 }
  0xce   : > { %v450_v15 = vsel %vm449_vm7, %v446_v56, %v448_v18  ;;  %v451_v16 = vsel %vm449_vm7, %v448_v18, %v446_v56  ;;  %v425_v17 = vsel %vm424_vm8, %v421_v57, %v423_v10  ;;  %v426_v19 = vsel %vm424_vm8, %v423_v10, %v421_v57 }
  0xcf   : > { %v452_v20 = vmul.f32 %v2713_v58, %v451_v16  ;;  %v453_v21 = vmul.f32 %v2716_v59, %v450_v15  ;;  %v427_v22 = vmul.f32 %v2722_v61, %v426_v19  ;;  %v428_v23 = vmul.f32 %v2725_v62, %v425_v17  ;;  %910 = vrot.lane.b32.xlu1 %v905_v5, %s2267_s20  ;;  %s2786_s20 = sld [smem:[#allocation5 + $0x44]] }
  0xd0   : > { %1049 = vrot.lane.b32.xlu0 %v1044_v6, %s2278_s9  ;;  %v1625_v56 = vmul.f32 %v1624_v43, %v2434_v55  ;;  %v1649_v5 = vstv %s2761_s0  ;;  %v2820_v6 = vsel %vm381_vm13, 1.0, %v2245_v2  ;;  %v1651_v18 = vstv %s2768_s21  ;;  %s2892_s9 = sld [smem:[#allocation5 + $0x4a]]  ;;  %s2284_s0 = smov 79  }
  0xd1   : > { %v454_v27 = vadd.f32 %v452_v20, %v427_v22  ;;  %v455_v28 = vadd.f32 %v453_v21, %v428_v23  ;;  %v475_v29 = vpop.permute.xlu1 %474  ;;  %v473_v30 = vpop.permute.xlu0 %472  ;;  %v1469_v17 = vrot.slane %v1460_v54, %v2444_v63  ;;  %v1650_v19 = vmul.f32 %v1649_v5, %v2434_v55  ;;  %s2916_s21 = sld [smem:[#allocation5 + $0x45]] }
  0xd2   : > { %v477_v32 = vsel %vm476_vm10, %v473_v30, %v475_v29  ;;  %v478_v34 = vsel %vm476_vm10, %v475_v29, %v473_v30  ;;  %v1628_v22 = vadd.f32 %v1627_v4, %v1625_v56  ;;  %v1652_v23 = vmul.f32 %v1651_v18, %v2430_v52 }
  0xd3   : > { %v479_v38 = vmul.f32 %v2737_v7, %v478_v34  ;;  %v480_v39 = vmul.f32 %v2773_v25, %v477_v32  ;;  %1254 = vrot.lane.b32.xlu1 %v1249_v8, %s2279_s23  ;;  %v1440_v8 = vrot.slane %v1435_v0, %v2440_v60  ;;  %v1483_v56 = vstv %s2843_s30  ;;  %s2954_s30 = sld [smem:[#allocation5 + $0x30]] }
  0xd4   : > { %1252 = vrot.lane.b32.xlu0 %v1245_v26, %s2279_s23  ;;  %v1465_v26 = vrot.slane %v1460_v54, %v2440_v60  ;;  %v1653_v43 = vadd.f32 %v1652_v23, %v1650_v19  ;;  %v2881_v54 = vld [vmem:[#allocation3] sm:$0x3]  ;;  %vm617_vm7 = vcmp.lt.s32.totalorder %v2661_v24, 35  ;;  %vm642_vm8 = vcmp.lt.s32.totalorder %v2661_v24, 34  ;;  %s2935_s23 = sld [smem:[#allocation5 + $0x53]] }
  0xd5   : > { %v502_v46 = vpop.permute.xlu1 %501  ;;  %v481_v47 = vadd.f32 %v479_v38, %v454_v27  ;;  %v482_v48 = vadd.f32 %v480_v39, %v455_v28  ;;  %v500_v49 = vpop.permute.xlu0 %499  ;;  %v921_v14 = vstv %s2786_s20  ;;  %v920_v27 = vmul.f32 %v919_v13, %v2434_v55  ;;  %s2285_s20 = smov 14  }
  0xd6   : > { %v504_v51 = vsel %vm503_vm12, %v500_v49, %v502_v46  ;;  %v505_v53 = vsel %vm503_vm12, %v502_v46, %v500_v49  ;;  %v922_v28 = vmul.f32 %v921_v14, %v2430_v52  ;;  %v1290_v52 = vstv %s2813_s28  ;;  %s2286_s28 = smov 110  }
  0xd7   : > { %v506_v57 = vadd.f32 %v505_v53, %v481_v47  ;;  %v507_v3 = vadd.f32 %v504_v51, %v482_v48  ;;  %1279 = vrot.lane.b32.xlu1 %v1274_v42, %s2280_s29  ;;  %v1637_v42 = vrot.slane %v1628_v22, %v2444_v63  ;;  %v1633_v46 = vrot.slane %v1628_v22, %v2440_v60 }
  0xd8   : > { %1277 = vrot.lane.b32.xlu0 %v1270_v44, %s2280_s29  ;;  %v2872_v44 = vsel %vm396_vm3, 1.0, %v2245_v2  ;;  %v923_v47 = vadd.f32 %v922_v28, %v920_v27  ;;  %v1289_v53 = vmul.f32 %v1288_v36, %v2434_v55  ;;  %v1291_v40 = vmul.f32 %v2881_v54, %v1290_v52  ;;  %s2950_s29 = sld [smem:[#allocation5 + $0x5a]] }
  0xd9   : > { %v527_v10 = vpop.permute.xlu1 %526  ;;  %v525_v11 = vpop.permute.xlu0 %524  ;;  %v1662_v4 = vrot.slane %v1653_v43, %v2444_v63  ;;  %v1658_v5 = vrot.slane %v1653_v43, %v2440_v60  ;;  %v1485_v18 = vstv %s2852_s4  ;;  %v1076_v36 = vstv %s2884_s8  ;;  %s2964_s4 = sld [smem:[#allocation5 + $0x61]] }
  0xda   : > { %v529_v15 = vsel %vm528_vm14, %v525_v11, %v527_v10  ;;  %v530_v16 = vsel %vm528_vm14, %v527_v10, %v525_v11  ;;  %v1486_v27 = vmul.f32 %v2881_v54, %v1485_v18  ;;  %v928_v28 = vrot.slane %v923_v47, %v2440_v60  ;;  %s2982_s8 = sld [smem:[#allocation5 + $0x1b]] }
  0xdb   : > { %v531_v20 = vmul.f32 %v2784_v31, %v530_v16  ;;  %v532_v21 = vmul.f32 %v2820_v6, %v529_v15  ;;  %1449 = vrot.lane.b32.xlu1 %v1444_v50, %s2281_s3  ;;  %v1292_v15 = vadd.f32 %v1291_v40, %v1289_v53  ;;  %v1484_v16 = vmul.f32 %v1483_v56, %v2434_v55 }
  0xdc   : > { %1447 = vrot.lane.b32.xlu0 %v1440_v8, %s2281_s3  ;;  %v932_v8 = vrot.slane %v923_v47, %v2444_v63  ;;  %v1078_v52 = vstv %s2892_s9  ;;  %vm696_vm10 = vcmp.lt.s32.totalorder %v2661_v24, 32  ;;  %v946_v56 = vstv %s2907_s11  ;;  %s2287_s3 = smov 94   ;;  %s2986_s9 = sld [smem:[#allocation5 + $0x4c]] }
  0xdd   : > { %v533_v29 = vadd.f32 %v531_v20, %v506_v57  ;;  %v534_v30 = vadd.f32 %v532_v21, %v507_v3  ;;  %v554_v0 = vpop.permute.xlu1 %553  ;;  %v552_v32 = vpop.permute.xlu0 %551  ;;  %v1676_v20 = vstv %s2856_s5  ;;  %v1678_v21 = vstv %s2864_s6  ;;  %s2971_s5 = sld [smem:[#allocation5 + $0x1a]]  ;;  %s2288_s6 = smov 78  }
  0xde   : > { %v556_v34 = vsel %vm555_vm2, %v552_v32, %v554_v0  ;;  %v557_v35 = vsel %vm555_vm2, %v554_v0, %v552_v32  ;;  %v1677_v0 = vmul.f32 %v1676_v20, %v2434_v55  ;;  %v1679_v32 = vmul.f32 %v2881_v54, %v1678_v21  ;;  %s2290_s11 = smov 13  }
  0xdf   : > { %v558_v38 = vmul.f32 %v2826_v9, %v557_v35  ;;  %v559_v39 = vmul.f32 %v2832_v12, %v556_v34  ;;  %1474 = vrot.lane.b32.xlu1 %v1469_v17, %s2282_s7  ;;  %v1487_v43 = vadd.f32 %v1486_v27, %v1484_v16  ;;  %v1079_v53 = vmul.f32 %v2881_v54, %v1078_v52 }
  0xe0   : > { %1472 = vrot.lane.b32.xlu0 %v1465_v26, %s2282_s7  ;;  %v947_v16 = vmul.f32 %v946_v56, %v2434_v55  ;;  %v1315_v21 = vstv %s2928_s22  ;;  %vm748_vm12 = vcmp.lt.s32.totalorder %v2661_v24, 30  ;;  %s2978_s7 = sld [smem:[#allocation5 + $0x4b]]  ;;  %vm775_vm13 = vcmp.lt.s32.totalorder %v2661_v24, 29  ;;  %s2293_s22 = smov 77  }
  0xe1   : > { %v560_v48 = vadd.f32 %v558_v38, %v533_v29  ;;  %v561_v49 = vadd.f32 %v559_v39, %v534_v30  ;;  %v581_v50 = vpop.permute.xlu1 %580  ;;  %v579_v51 = vpop.permute.xlu0 %578  ;;  %vm782_vm14 = vcmp.ge.s32.totalorder %v2661_v24, 32  ;;  %vm860_vm2 = vcmp.lt.s32.totalorder %v2661_v24, 17 }
  0xe2   : > { %v583_v2 = vsel %vm582_vm5, %v579_v51, %v581_v50  ;;  %v584_v41 = vsel %vm582_vm5, %v581_v50, %v579_v51  ;;  %v1077_v51 = vmul.f32 %v1076_v36, %v2434_v55  ;;  %vm887_vm3 = vcmp.lt.s32.totalorder %v2661_v24, 16 }
  0xe3   : > { %v585_v57 = vmul.f32 %v2872_v44, %v584_v41  ;;  %v586_v3 = vmul.f32 %v2877_v45, %v583_v2  ;;  %1642 = vrot.lane.b32.xlu1 %v1637_v42, %s2283_s10  ;;  %v1301_v42 = vrot.slane %v1292_v15, %v2444_v63  ;;  %v1680_v41 = vadd.f32 %v1679_v32, %v1677_v0 }
  0xe4   : > { %1640 = vrot.lane.b32.xlu0 %v1633_v46, %s2283_s10  ;;  %v1297_v46 = vrot.slane %v1292_v15, %v2440_v60  ;;  %v1080_v15 = vadd.f32 %v1079_v53, %v1077_v51  ;;  %v1316_v32 = vmul.f32 %v1315_v21, %v2434_v55  ;;  %s2289_s10 = smov 127   ;;  %vm1202_vm5 = vcmp.lt.s32.totalorder %v2661_v24, 114 }
  0xe5   : > { %v587_v10 = vadd.f32 %v585_v57, %v560_v48  ;;  %v2902_v11 = vadd.f32 %v586_v3, %v561_v49  ;;  %v616_v13 = vpop.permute.xlu1 %615  ;;  %v614_v14 = vpop.permute.xlu0 %613  ;;  %v1689_v27 = vrot.slane %v1680_v41, %v2444_v63 }
  0xe6   : > { %v618_v17 = vsel %vm617_vm7, %v614_v14, %v616_v13  ;;  %v619_v19 = vsel %vm617_vm7, %v616_v13, %v614_v14  ;;  %v1089_v52 = vrot.slane %v1080_v15, %v2444_v63  ;;  %vm1397_vm7 = vcmp.lt.s32.totalorder %v2661_v24, 98 }
  0xe7   : > { %v2911_v22 = vsel %vm589_vm6, %v587_v10, 0.0  ;;  %v620_v23 = vmul.f32 %v2722_v61, %v619_v19  ;;  %v621_v26 = vmul.f32 %v2725_v62, %v618_v17  ;;  %1667 = vrot.lane.b32.xlu1 %v1662_v4, %s2284_s0  ;;  %v1496_v4 = vrot.slane %v1487_v43, %v2444_v63 }
  0xe8   : > { %1665 = vrot.lane.b32.xlu0 %v1658_v5, %s2284_s0  ;;  %v948_v5 = vstv %s2916_s21  ;;  %s2291_s0 = smov 109   ;;  %s2292_s21 = smov 93   ;;  %vm1372_vm6 = vcmp.lt.s32.totalorder %v2661_v24, 99 }
  0xe9   : > { %v641_v29 = vpop.permute.xlu1 %640  ;;  %v639_v30 = vpop.permute.xlu0 %638  ;;  %v949_v20 = vmul.f32 %v2881_v54, %v948_v5 }
  0xea   : > { %v643_v34 = vsel %vm642_vm8, %v639_v30, %v641_v29  ;;  %v644_v35 = vsel %vm642_vm8, %v641_v29, %v639_v30  ;;  %v1317_v29 = vstv %s2935_s23  ;;  %s2295_s23 = smov 125   ;;  %vm1565_vm8 = vcmp.lt.s32.totalorder %v2661_v24, 83 }
  0xeb   : > { %v645_v38 = vmul.f32 %v2713_v58, %v644_v35  ;;  %v646_v39 = vmul.f32 %v2716_v59, %v643_v34  ;;  %937 = vrot.lane.b32.xlu1 %v932_v8, %s2285_s20  ;;  %v1492_v8 = vrot.slane %v1487_v43, %v2440_v60  ;;  %v1510_v34 = vstv %s2939_s27  ;;  %s1904_s27 = sld [smem:[#allocation5 + $0x18]] }
  0xec   : > { %935 = vrot.lane.b32.xlu0 %v928_v28, %s2285_s20  ;;  %v1685_v28 = vrot.slane %v1680_v41, %v2440_v60  ;;  %v1318_v43 = vmul.f32 %v2881_v54, %v1317_v29  ;;  %v1511_v53 = vmul.f32 %v1510_v34, %v2434_v55  ;;  %s2294_s20 = smov 126  }
  0xed   : > { %v647_v47 = vadd.f32 %v645_v38, %v620_v23  ;;  %v648_v48 = vadd.f32 %v646_v39, %v621_v26  ;;  %v668_v49 = vpop.permute.xlu1 %667  ;;  %v666_v50 = vpop.permute.xlu0 %665  ;;  %v950_v38 = vadd.f32 %v949_v20, %v947_v16 }
  0xee   : > { %v670_v40 = vsel %vm669_vm9, %v666_v50, %v668_v49  ;;  %v671_v2 = vsel %vm669_vm9, %v668_v49, %v666_v50  ;;  %v1319_v5 = vadd.f32 %v1318_v43, %v1316_v32  ;;  %vm1590_vm9 = vcmp.lt.s32.totalorder %v2661_v24, 82 }
  0xef   : > { %v672_v57 = vmul.f32 %v2737_v7, %v671_v2  ;;  %v673_v3 = vmul.f32 %v2773_v25, %v670_v40  ;;  %1306 = vrot.lane.b32.xlu1 %v1301_v42, %s2286_s28  ;;  %v1703_v40 = vstv %s2954_s30  ;;  %v959_v56 = vrot.slane %v950_v38, %v2444_v63  ;;  %s1998_s30 = sshll.u32 %s2233_s15, 5  ;;  %s2296_s15 = smov [#allocation9]  }
  0xf0   : > { %1304 = vrot.lane.b32.xlu0 %v1297_v46, %s2286_s28  ;;  %v1512_v46 = vstv %s2950_s29  ;;  %v1704_v16 = vmul.f32 %v1703_v40, %v2434_v55  ;;  %v1324_v29 = vrot.slane %v1319_v5, %v2440_v60  ;;  %s1953_s28 = sld [smem:[#allocation5 + $0x49]]  ;;  %s1880_s29 = sshll.u32 %s2401_s18, 1 }
  0xf1   : > { %v695_v18 = vpop.permute.xlu1 %694  ;;  %v674_v10 = vadd.f32 %v672_v57, %v647_v47  ;;  %v675_v13 = vadd.f32 %v673_v3, %v648_v48  ;;  %v693_v14 = vpop.permute.xlu0 %692  ;;  %v1085_v47 = vrot.slane %v1080_v15, %v2440_v60  ;;  %v1513_v57 = vmul.f32 %v2881_v54, %v1512_v46 }
  0xf2   : > { %v697_v17 = vsel %vm696_vm10, %v693_v14, %v695_v18  ;;  %v698_v19 = vsel %vm696_vm10, %v695_v18, %v693_v14  ;;  %v955_v18 = vrot.slane %v950_v38, %v2440_v60  ;;  %v1132_v38 = vstv %s2986_s9 }
  0xf3   : > { %v699_v23 = vadd.f32 %v698_v19, %v674_v10  ;;  %v700_v26 = vadd.f32 %v697_v17, %v675_v13  ;;  %1501 = vrot.lane.b32.xlu1 %v1496_v4, %s2287_s3  ;;  %v1103_v17 = vstv %s2971_s5  ;;  %v1514_v21 = vadd.f32 %v1513_v57, %v1511_v53 }
  0xf4   : > { %1499 = vrot.lane.b32.xlu0 %v1492_v8, %s2287_s3  ;;  %v1705_v8 = vstv %s2964_s4  ;;  %v1133_v57 = vmul.f32 %v2881_v54, %v1132_v38  ;;  %vm1229_vm10 = vcmp.lt.s32.totalorder %v2661_v24, 113  ;;  %s153_s3 = scalar_lea.vmem [#allocation9], %s1880_s29 }
  0xf5   : > { %v720_v30 = vpop.permute.xlu1 %719  ;;  %v718_v0 = vpop.permute.xlu0 %717  ;;  %v1523_v43 = vrot.slane %v1514_v21, %v2444_v63  ;;  %s1790_s4 = sshll.u32 %s153_s3, 4  ;;  %s1791_s4 = int_to_ptr.vmem [resolvable:$true] %s1790_s4 }
  0xf6   : > { %v722_v35 = vsel %vm721_vm11, %v718_v0, %v720_v30  ;;  %v723_v36 = vsel %vm721_vm11, %v720_v30, %v718_v0  ;;  %v1104_v30 = vmul.f32 %v1103_v17, %v2434_v55  ;;  %v1105_v0 = vstv %s2978_s7  ;;  %s1788_s7 = scalar_lea.hbm %s3220_s2, %s1998_s30  ;;  %s2159_s9 = scalar_lea.vmem %s1791_s4, 32 }
  0xf7   : > { %v724_v39 = vmul.f32 %v2784_v31, %v723_v36  ;;  %v725_v42 = vmul.f32 %v2820_v6, %v722_v35  ;;  %1694 = vrot.lane.b32.xlu1 %v1689_v27, %s2288_s6  ;;  %vm1424_vm11 = vcmp.lt.s32.totalorder %v2661_v24, 97  ;;  %p2160_p8 = scmp.ne.s32.totalorder %s1791_s4, %s2159_s9 }
  0xf8   : > { %1692 = vrot.lane.b32.xlu0 %v1685_v28, %s2288_s6  ;;  %v1328_v28 = vrot.slane %v1319_v5, %v2444_v63 }
  0xf9   : > { %v726_v48 = vadd.f32 %v724_v39, %v699_v23  ;;  %v727_v49 = vadd.f32 %v725_v42, %v700_v26  ;;  %v747_v50 = vpop.permute.xlu1 %746  ;;  %v745_v51 = vpop.permute.xlu0 %744  ;;  %v1706_v23 = vmul.f32 %v2881_v54, %v1705_v8  ;;  %p2161_p11 = pnand %p2160_p8, %p2366_p9 }
  0xfa   : > { %v749_v2 = vsel %vm748_vm12, %v745_v51, %v747_v50  ;;  %v750_v41 = vsel %vm748_vm12, %v747_v50, %v745_v51  ;;  %v1106_v50 = vmul.f32 %v2881_v54, %v1105_v0  ;;  %v1519_v51 = vrot.slane %v1514_v21, %v2440_v60 }
  0xfb   : > { %v751_v3 = vmul.f32 %v2826_v9, %v750_v41  ;;  %v752_v4 = vmul.f32 %v2832_v12, %v749_v2  ;;  %1094 = vrot.lane.b32.xlu1 %v1089_v52, %s2289_s10  ;;  %v1130_v52 = vstv %s2982_s8  ;;  %v1707_v46 = vadd.f32 %v1706_v23, %v1704_v16  ;;  %s1776_s8 = scalar_lea.sflag [#allocation8], %s2401_s18  ;;  %p2162_p12 = pneg %p2161_p11 }
  0xfc   : > { %1092 = vrot.lane.b32.xlu0 %v1085_v47, %s2289_s10  ;;  %v1107_v8 = vadd.f32 %v1106_v50, %v1104_v30  ;;  %vm1617_vm12 = vcmp.lt.s32.totalorder %v2661_v24, 81  ;;  %s2163_s10 = sshll.u32 %s2296_s15, 4  ;;  %s2164_s10 = int_to_ptr.vmem [resolvable:$false] %s2163_s10 }
  0xfd   : > { %v753_v10 = vadd.f32 %v751_v3, %v726_v48  ;;  %v754_v13 = vadd.f32 %v752_v4, %v727_v49  ;;  %v774_v14 = vpop.permute.xlu1 %773  ;;  %v772_v15 = vpop.permute.xlu0 %771  ;;  %v1716_v5 = vrot.slane %v1707_v46, %v2444_v63  ;;  %p2166_p0 = scmp.lt.s32.totalorder %s1791_s4, %s2164_s10 }
  0xfe   : > { %v776_v19 = vsel %vm775_vm13, %v772_v15, %v774_v14  ;;  %v777_v20 = vsel %vm775_vm13, %v774_v14, %v772_v15  ;;  %v1116_v21 = vrot.slane %v1107_v8, %v2444_v63  ;;  %vm999_vm13 = vcmp.lt.s32.totalorder %v2661_v24, 3 }
  0xff   : > { %v778_v26 = vmul.f32 %v2872_v44, %v777_v20  ;;  %v779_v27 = vmul.f32 %v2877_v45, %v776_v19  ;;  %964 = vrot.lane.b32.xlu1 %v959_v56, %s2290_s11  ;;  %v1131_v56 = vmul.f32 %v1130_v52, %v2434_v55 }
 0x100   : > { %962 = vrot.lane.b32.xlu0 %v955_v18, %s2290_s11  ;;  %v1712_v18 = vrot.slane %v1707_v46, %v2440_v60  ;;  %s2165_s11 = scalar_lea.vmem %s2164_s10, 64 }
 0x101   : > { %v780_v32 = vadd.f32 %v778_v26, %v753_v10  ;;  %v3014_v34 = vadd.f32 %v779_v27, %v754_v13  ;;  %v807_v35 = vpop.permute.xlu1 %806  ;;  %v805_v36 = vpop.permute.xlu0 %804  ;;  %v1134_v23 = vadd.f32 %v1133_v57, %v1131_v56  ;;  %v1112_v26 = vrot.slane %v1107_v8, %v2440_v60  ;;  %p2167_p1 = scmp.lt.s32.totalorder %s2165_s11, %s2159_s9 }
 0x102   : > { %v809_v39 = vsel %vm808_vm15, %v805_v36, %v807_v35  ;;  %v810_v42 = vsel %vm808_vm15, %v807_v35, %v805_v36  ;;  %vm912_vm15 = vcmp.lt.s32.totalorder %v2661_v24, 15 }
 0x103   : > { %v3021_v47 = vsel %vm782_vm14, %v780_v32, 0.0  ;;  %v811_v48 = vmul.f32 %v2722_v61, %v810_v42  ;;  %v812_v49 = vmul.f32 %v2725_v62, %v809_v39  ;;  %1333 = vrot.lane.b32.xlu1 %v1328_v28, %s2291_s0  ;;  %v1143_v52 = vrot.slane %v1134_v23, %v2444_v63  ;;  %p2168_p2 = por %p2167_p1, %p2166_p0 }
 0x104   : > { %1331 = vrot.lane.b32.xlu0 %v1324_v29, %s2291_s0  ;;  %v1139_v38 = vrot.slane %v1134_v23, %v2440_v60  ;;  %vm1024_vm14 = vcmp.lt.s32.totalorder %v2661_v24, 2 }
 0x105   : > { %v832_v53 = vpop.permute.xlu1 %831  ;;  %v830_v40 = vpop.permute.xlu0 %829  ;;  %p2169_p3 = pnand %p2168_p2, %p2162_p12 }
 0x106   : > { %v834_v2 = vsel %vm833_vm1, %v830_v40, %v832_v53  ;;  %v835_v41 = vsel %vm833_vm1, %v832_v53, %v830_v40  ;;  %vm1051_vm1 = vcmp.lt.s32.totalorder %v2661_v24, 1 }
 0x107   : > { %v836_v3 = vmul.f32 %v2713_v58, %v835_v41  ;;  %v837_v4 = vmul.f32 %v2716_v59, %v834_v2  ;;  %1528 = vrot.lane.b32.xlu1 %v1523_v43, %s2292_s21 }
 0x108   : > { %1526 = vrot.lane.b32.xlu0 %v1519_v51, %s2292_s21 }
 0x109   : > { %v838_v10 = vadd.f32 %v836_v3, %v811_v48  ;;  %v839_v13 = vadd.f32 %v837_v4, %v812_v49  ;;  %v859_v14 = vpop.permute.xlu1 %858  ;;  %v857_v15 = vpop.permute.xlu0 %856 }
 0x10a   : > { %v861_v16 = vsel %vm860_vm2, %v857_v15, %v859_v14  ;;  %v862_v17 = vsel %vm860_vm2, %v859_v14, %v857_v15  ;;  %vm1256_vm2 = vcmp.lt.s32.totalorder %v2661_v24, 112 }
 0x10b   : > { %v863_v19 = vmul.f32 %v2737_v7, %v862_v17  ;;  %v864_v20 = vmul.f32 %v2773_v25, %v861_v16  ;;  %1721 = vrot.lane.b32.xlu1 %v1716_v5, %s2293_s22 }
 0x10c   : > { %1719 = vrot.lane.b32.xlu0 %v1712_v18, %s2293_s22 }
 0x10d   : > { %v886_v27 = vpop.permute.xlu1 %885  ;;  %v865_v28 = vadd.f32 %v863_v19, %v838_v10  ;;  %v866_v29 = vadd.f32 %v864_v20, %v839_v13  ;;  %v884_v30 = vpop.permute.xlu0 %883 }
 0x10e   : > { %v888_v0 = vsel %vm887_vm3, %v884_v30, %v886_v27  ;;  %v889_v32 = vsel %vm887_vm3, %v886_v27, %v884_v30  ;;  %vm1281_vm3 = vcmp.lt.s32.totalorder %v2661_v24, 111 }
 0x10f   : > { %v3047_v35 = vadd.f32 %v889_v32, %v865_v28  ;;  %v3049_v36 = vadd.f32 %v888_v0, %v866_v29  ;;  %1121 = vrot.lane.b32.xlu1 %v1116_v21, %s2294_s20 }
 0x110   : > { %1119 = vrot.lane.b32.xlu0 %v1112_v26, %s2294_s20 }
 0x111   : > { %v1174_v39 = vpop.permute.xlu1 %1173  ;;  %v3053_v42 = vpop.permute.xlu0 %908 }
 0x113   : > { %1148 = vrot.lane.b32.xlu1 %v1143_v52, %s2295_s23 }
 0x114   : > { %1146 = vrot.lane.b32.xlu0 %v1139_v38, %s2295_s23 }
 0x115   : > { %v1199_v43 = vpop.permute.xlu1 %1198  ;;  %v1176_v46 = vpop.permute.xlu0 %1175 }
 0x116   : > { %v1178_v48 = vsel %vm1177_vm4, %v1174_v39, %v1176_v46  ;;  %v1179_v49 = vsel %vm1177_vm4, %v1176_v46, %v1174_v39  ;;  %vm1451_vm4 = vcmp.lt.s32.totalorder %v2661_v24, 96 }
 0x117   : > { %v1180_v50 = vmul.f32 %v2722_v61, %v1178_v48  ;;  %v1181_v51 = vmul.f32 %v2725_v62, %v1179_v49 }
 0x119   : > { %v1369_v53 = vpop.permute.xlu1 %1368  ;;  %v1201_v40 = vpop.permute.xlu0 %1200 }
 0x11a   : > { %v1203_v2 = vsel %vm1202_vm5, %v1199_v43, %v1201_v40  ;;  %v1204_v41 = vsel %vm1202_vm5, %v1201_v40, %v1199_v43  ;;  %vm1476_vm5 = vcmp.lt.s32.totalorder %v2661_v24, 95 }
 0x11b   : > { %v1205_v56 = vmul.f32 %v2713_v58, %v1203_v2  ;;  %v1206_v57 = vmul.f32 %v2716_v59, %v1204_v41 }
 0x11d   : > { %v1207_v3 = vadd.f32 %v1205_v56, %v1180_v50  ;;  %v1208_v4 = vadd.f32 %v1206_v57, %v1181_v51  ;;  %v1394_v5 = vpop.permute.xlu1 %1393  ;;  %v1371_v8 = vpop.permute.xlu0 %1370 }
 0x11e   : > { %v1373_v18 = vsel %vm1372_vm6, %v1369_v53, %v1371_v8  ;;  %v1374_v10 = vsel %vm1372_vm6, %v1371_v8, %v1369_v53  ;;  %vm1644_vm6 = vcmp.lt.s32.totalorder %v2661_v24, 80 }
 0x11f   : > { %v1375_v13 = vmul.f32 %v2722_v61, %v1373_v18  ;;  %v1376_v14 = vmul.f32 %v2725_v62, %v1374_v10 }
 0x121   : > { %v1562_v15 = vpop.permute.xlu1 %1561  ;;  %v1396_v16 = vpop.permute.xlu0 %1395 }
 0x122   : > { %v1398_v17 = vsel %vm1397_vm7, %v1394_v5, %v1396_v16  ;;  %v1399_v19 = vsel %vm1397_vm7, %v1396_v16, %v1394_v5  ;;  %vm1669_vm7 = vcmp.lt.s32.totalorder %v2661_v24, 79 }
 0x123   : > { %v1400_v20 = vmul.f32 %v2713_v58, %v1398_v17  ;;  %v1401_v21 = vmul.f32 %v2716_v59, %v1399_v19 }
 0x125   : > { %v1402_v23 = vadd.f32 %v1400_v20, %v1375_v13  ;;  %v1403_v26 = vadd.f32 %v1401_v21, %v1376_v14  ;;  %v1587_v27 = vpop.permute.xlu1 %1586  ;;  %v1564_v28 = vpop.permute.xlu0 %1563 }
 0x126   : > { %v1566_v29 = vsel %vm1565_vm8, %v1562_v15, %v1564_v28  ;;  %v1567_v30 = vsel %vm1565_vm8, %v1564_v28, %v1562_v15  ;;  %vm939_vm8 = vcmp.lt.s32.totalorder %v2661_v24, 14 }
 0x127   : > { %v1568_v0 = vmul.f32 %v2722_v61, %v1566_v29  ;;  %v1569_v32 = vmul.f32 %v2725_v62, %v1567_v30 }
 0x129   : > { %v1226_v52 = vpop.permute.xlu1 %1225  ;;  %v1589_v38 = vpop.permute.xlu0 %1588 }
 0x12a   : > { %v1591_v39 = vsel %vm1590_vm9, %v1587_v27, %v1589_v38  ;;  %v1592_v43 = vsel %vm1590_vm9, %v1589_v38, %v1587_v27  ;;  %vm1308_vm9 = vcmp.lt.s32.totalorder %v2661_v24, 110 }
 0x12b   : > { %v1593_v46 = vmul.f32 %v2713_v58, %v1591_v39  ;;  %v1594_v48 = vmul.f32 %v2716_v59, %v1592_v43 }
 0x12d   : > { %v1595_v49 = vadd.f32 %v1593_v46, %v1568_v0  ;;  %v1596_v50 = vadd.f32 %v1594_v48, %v1569_v32  ;;  %v1421_v51 = vpop.permute.xlu1 %1420  ;;  %v1228_v53 = vpop.permute.xlu0 %1227 }
 0x12e   : > { %v1230_v40 = vsel %vm1229_vm10, %v1226_v52, %v1228_v53  ;;  %v1231_v2 = vsel %vm1229_vm10, %v1228_v53, %v1226_v52  ;;  %vm1503_vm10 = vcmp.lt.s32.totalorder %v2661_v24, 94 }
 0x12f   : > { %v1232_v41 = vmul.f32 %v2737_v7, %v1230_v40  ;;  %v1233_v56 = vmul.f32 %v2773_v25, %v1231_v2 }
 0x131   : > { %v1614_v57 = vpop.permute.xlu1 %1613  ;;  %v1423_v5 = vpop.permute.xlu0 %1422  ;;  %v1234_v8 = vadd.f32 %v1232_v41, %v1207_v3  ;;  %v1235_v18 = vadd.f32 %v1233_v56, %v1208_v4 }
 0x132   : > { %v1425_v10 = vsel %vm1424_vm11, %v1421_v51, %v1423_v5  ;;  %v1426_v13 = vsel %vm1424_vm11, %v1423_v5, %v1421_v51  ;;  %vm1696_vm11 = vcmp.lt.s32.totalorder %v2661_v24, 78 }
 0x133   : > { %v1427_v14 = vmul.f32 %v2737_v7, %v1425_v10  ;;  %v1428_v15 = vmul.f32 %v2773_v25, %v1426_v13 }
 0x135   : > { %v996_v16 = vpop.permute.xlu1 %995  ;;  %v1616_v17 = vpop.permute.xlu0 %1615  ;;  %v1429_v19 = vadd.f32 %v1427_v14, %v1402_v23  ;;  %v1430_v20 = vadd.f32 %v1428_v15, %v1403_v26 }
 0x136   : > { %v1618_v21 = vsel %vm1617_vm12, %v1614_v57, %v1616_v17  ;;  %v1619_v27 = vsel %vm1617_vm12, %v1616_v17, %v1614_v57  ;;  %vm1096_vm12 = vcmp.lt.s32.totalorder %v2661_v24, 127 }
 0x137   : > { %v1620_v28 = vmul.f32 %v2737_v7, %v1618_v21  ;;  %v1621_v29 = vmul.f32 %v2773_v25, %v1619_v27 }
 0x139   : > { %v1021_v3 = vpop.permute.xlu1 %1020  ;;  %v998_v4 = vpop.permute.xlu0 %997  ;;  %v3083_v30 = vadd.f32 %v1620_v28, %v1595_v49  ;;  %v3085_v0 = vadd.f32 %v1621_v29, %v1596_v50 }
 0x13a   : > { %v1000_v32 = vsel %vm999_vm13, %v996_v16, %v998_v4  ;;  %v1001_v52 = vsel %vm999_vm13, %v998_v4, %v996_v16  ;;  %vm966_vm13 = vcmp.lt.s32.totalorder %v2661_v24, 13 }
 0x13b   : > { %v1002_v38 = vmul.f32 %v2722_v61, %v1001_v52  ;;  %v1003_v23 = vmul.f32 %v2725_v62, %v1000_v32 }
 0x13d   : > { %v1048_v26 = vpop.permute.xlu1 %1047  ;;  %v1023_v39 = vpop.permute.xlu0 %1022 }
 0x13e   : > { %v1025_v43 = vsel %vm1024_vm14, %v1021_v3, %v1023_v39  ;;  %v1026_v46 = vsel %vm1024_vm14, %v1023_v39, %v1021_v3  ;;  %vm1335_vm14 = vcmp.lt.s32.totalorder %v2661_v24, 109 }
 0x13f   : > { %v1027_v48 = vmul.f32 %v2713_v58, %v1026_v46  ;;  %v1028_v51 = vmul.f32 %v2716_v59, %v1025_v43 }
 0x141   : > { %v1029_v49 = vadd.f32 %v1027_v48, %v1002_v38  ;;  %v1030_v50 = vadd.f32 %v1028_v51, %v1003_v23  ;;  %v911_v53 = vpop.permute.xlu1 %910 }
 0x142   : > { %v913_v61 = vsel %vm912_vm15, %v3053_v42, %v911_v53  ;;  %v914_v62 = vsel %vm912_vm15, %v911_v53, %v3053_v42  ;;  %v1050_v40 = vpop.permute.xlu0 %1049  ;;  %vm973_vm15 = vcmp.ge.s32.totalorder %v2661_v24, 16 }
 0x143   : > { %v915_v2 = vmul.f32 %v2784_v31, %v914_v62  ;;  %v916_v41 = vmul.f32 %v2820_v6, %v913_v61  ;;  %v1052_v56 = vsel %vm1051_vm1, %v1048_v26, %v1050_v40  ;;  %v1053_v58 = vsel %vm1051_vm1, %v1050_v40, %v1048_v26 }
 0x144   : > { %v1054_v59 = vmul.f32 %v2737_v7, %v1053_v58  ;;  %v1055_v57 = vmul.f32 %v2773_v25, %v1052_v56  ;;  %vm1530_vm1 = vcmp.lt.s32.totalorder %v2661_v24, 93 }
 0x145   : > { %v3102_v5 = vadd.f32 %v915_v2, %v3047_v35  ;;  %v3105_v10 = vadd.f32 %v916_v41, %v3049_v36  ;;  %v1255_v42 = vpop.permute.xlu1 %1254 }
 0x146   : > { %v3107_v13 = vadd.f32 %v1054_v59, %v1029_v49  ;;  %v3109_v14 = vadd.f32 %v1055_v57, %v1030_v50  ;;  %v1253_v15 = vpop.permute.xlu0 %1252 }
 0x147   : > { %v1257_v16 = vsel %vm1256_vm2, %v1253_v15, %v1255_v42  ;;  %v1258_v17 = vsel %vm1256_vm2, %v1255_v42, %v1253_v15  ;;  %vm1345_vm2 = vcmp.lt.s32.totalorder %v2675_v33, 240 }
 0x148   : > { %v1259_v21 = vadd.f32 %v1257_v16, %v1234_v8  ;;  %v1260_v7 = vadd.f32 %v1258_v17, %v1235_v18 }
 0x149   : > { %v1280_v25 = vpop.permute.xlu1 %1279 }
 0x14a   : > { %v1278_v27 = vpop.permute.xlu0 %1277 }
 0x14b   : > { %v1282_v28 = vsel %vm1281_vm3, %v1278_v27, %v1280_v25  ;;  %v1283_v35 = vsel %vm1281_vm3, %v1280_v25, %v1278_v27  ;;  %v1060_v27 = vstv %s1953_s28  ;;  %vm1723_vm3 = vcmp.lt.s32.totalorder %v2661_v24, 77 }
 0x14c   : > { %v1284_v29 = vmul.f32 %v2784_v31, %v1282_v28  ;;  %v1285_v36 = vmul.f32 %v2820_v6, %v1283_v35 }
 0x14d   : > { %v1450_v3 = vpop.permute.xlu1 %1449 }
 0x14e   : > { %v1286_v4 = vadd.f32 %v1284_v29, %v1259_v21  ;;  %v1287_v32 = vadd.f32 %v1285_v36, %v1260_v7  ;;  %v1448_v52 = vpop.permute.xlu0 %1447 }
 0x14f   : > { %v1452_v38 = vsel %vm1451_vm4, %v1448_v52, %v1450_v3  ;;  %v1453_v23 = vsel %vm1451_vm4, %v1450_v3, %v1448_v52  ;;  %vm1538_vm4 = vcmp.lt.s32.totalorder %v2675_v33, 224 }
 0x150   : > { %v1454_v8 = vadd.f32 %v1452_v38, %v1429_v19  ;;  %v1455_v18 = vadd.f32 %v1453_v23, %v1430_v20  ;;  %v1061_v23 = vmul.f32 %v2881_v54, %v1060_v27 }
 0x151   : > { %v1475_v26 = vpop.permute.xlu1 %1474 }
 0x152   : > { %v1473_v39 = vpop.permute.xlu0 %1472 }
 0x153   : > { %v1477_v43 = vsel %vm1476_vm5, %v1473_v39, %v1475_v26  ;;  %v1478_v46 = vsel %vm1476_vm5, %v1475_v26, %v1473_v39  ;;  %vm1123_vm5 = vcmp.lt.s32.totalorder %v2661_v24, 126 }
 0x154   : > { %v1479_v48 = vmul.f32 %v2784_v31, %v1477_v43  ;;  %v1480_v51 = vmul.f32 %v2820_v6, %v1478_v46 }
 0x155   : > { %v1643_v49 = vpop.permute.xlu1 %1642 }
 0x156   : > { %v1481_v50 = vadd.f32 %v1479_v48, %v1454_v8  ;;  %v1482_v53 = vadd.f32 %v1480_v51, %v1455_v18  ;;  %v1641_v61 = vpop.permute.xlu0 %1640 }
 0x157   : > { %v1645_v62 = vsel %vm1644_vm6, %v1641_v61, %v1643_v49  ;;  %v1646_v40 = vsel %vm1644_vm6, %v1643_v49, %v1641_v61  ;;  %vm1731_vm6 = vcmp.lt.s32.totalorder %v2675_v33, 208 }
 0x158   : > { %v1647_v19 = vadd.f32 %v1645_v62, %v3083_v30  ;;  %v1648_v20 = vadd.f32 %v1646_v40, %v3085_v0  ;;  %v1058_v0 = vstv %s1904_s27 }
 0x159   : > { %v1668_v2 = vpop.permute.xlu1 %1667  ;;  %v1059_v38 = vmul.f32 %v1058_v0, %v2434_v55 }
 0x15a   : > { %v1666_v41 = vpop.permute.xlu0 %1665 }
 0x15b   : > { %v1670_v56 = vsel %vm1669_vm7, %v1666_v41, %v1668_v2  ;;  %v1671_v58 = vsel %vm1669_vm7, %v1668_v2, %v1666_v41  ;;  %vm1150_vm7 = vcmp.lt.s32.totalorder %v2661_v24, 125 }
 0x15c   : > { %v1672_v59 = vmul.f32 %v2784_v31, %v1670_v56  ;;  %v1673_v57 = vmul.f32 %v2820_v6, %v1671_v58 }
 0x15d   : > { %v938_v42 = vpop.permute.xlu1 %937 }
 0x15e   : > { %v1674_v15 = vadd.f32 %v1672_v59, %v1647_v19  ;;  %v1675_v16 = vadd.f32 %v1673_v57, %v1648_v20  ;;  %v936_v17 = vpop.permute.xlu0 %935 }
 0x15f   : > { %v940_v30 = vsel %vm939_vm8, %v936_v17, %v938_v42  ;;  %v941_v21 = vsel %vm939_vm8, %v938_v42, %v936_v17 }
 0x160   : > { %v942_v7 = vmul.f32 %v2826_v9, %v941_v21  ;;  %v943_v25 = vmul.f32 %v2832_v12, %v940_v30 }
 0x161   : > { %v1307_v28 = vpop.permute.xlu1 %1306 }
 0x162   : > { %v944_v35 = vadd.f32 %v942_v7, %v3102_v5  ;;  %v945_v29 = vadd.f32 %v943_v25, %v3105_v10  ;;  %v1305_v36 = vpop.permute.xlu0 %1304  ;;  %v1062_v10 = vadd.f32 %v1061_v23, %v1059_v38 }
 0x163   : > { %v1309_v3 = vsel %vm1308_vm9, %v1305_v36, %v1307_v28  ;;  %v1310_v52 = vsel %vm1308_vm9, %v1307_v28, %v1305_v36 }
 0x164   : > { %v1311_v8 = vmul.f32 %v2826_v9, %v1309_v3  ;;  %v1312_v18 = vmul.f32 %v2832_v12, %v1310_v52  ;;  %v1067_v20 = vrot.slane %v1062_v10, %v2440_v60  ;;  %v1071_v2 = vrot.slane %v1062_v10, %v2444_v63 }
 0x165   : > { %v1502_v26 = vpop.permute.xlu1 %1501 }
 0x166   : > { %v1313_v39 = vadd.f32 %v1311_v8, %v1286_v4  ;;  %v1314_v43 = vadd.f32 %v1312_v18, %v1287_v32  ;;  %v1500_v46 = vpop.permute.xlu0 %1499  ;;  %v1075_v60 = vadd.f32 %v1071_v2, %v3109_v14 }
 0x167   : > { %v1504_v5 = vsel %vm1503_vm10, %v1500_v46, %v1502_v26  ;;  %v1505_v48 = vsel %vm1503_vm10, %v1502_v26, %v1500_v46 }
 0x168   : > { %v1506_v51 = vmul.f32 %v2826_v9, %v1504_v5  ;;  %v1507_v49 = vmul.f32 %v2832_v12, %v1505_v48 }
 0x169   : > { %v1695_v55 = vpop.permute.xlu1 %1694 }
 0x16a   : > { %v1508_v54 = vadd.f32 %v1506_v51, %v1481_v50  ;;  %v1509_v61 = vadd.f32 %v1507_v49, %v1482_v53  ;;  %v1693_v62 = vpop.permute.xlu0 %1692  ;;  %v1074_v53 = vadd.f32 %v1067_v20, %v3107_v13 }
 0x16b   : > { %v1697_v40 = vsel %vm1696_vm11, %v1693_v62, %v1695_v55  ;;  %v1698_v19 = vsel %vm1696_vm11, %v1695_v55, %v1693_v62 }
 0x16c   : > { %v1699_v4 = vmul.f32 %v2826_v9, %v1697_v40  ;;  %v1700_v32 = vmul.f32 %v2832_v12, %v1698_v19 }
 0x16d   : > { %v1095_v41 = vpop.permute.xlu1 %1094 }
 0x16e   : > { %v1701_v56 = vadd.f32 %v1699_v4, %v1674_v15  ;;  %v1702_v58 = vadd.f32 %v1700_v32, %v1675_v16  ;;  %v1093_v59 = vpop.permute.xlu0 %1092 }
 0x16f   : > { %v1097_v57 = vsel %vm1096_vm12, %v1093_v59, %v1095_v41  ;;  %v1098_v50 = vsel %vm1096_vm12, %v1095_v41, %v1093_v59 }
 0x170   : > { %v1099_v42 = vmul.f32 %v2784_v31, %v1097_v57  ;;  %v1100_v17 = vmul.f32 %v2820_v6, %v1098_v50 }
 0x171   : > { %v965_v30 = vpop.permute.xlu1 %964 }
 0x172   : > { %v1101_v63 = vadd.f32 %v1099_v42, %v1074_v53  ;;  %v1102_v21 = vadd.f32 %v1100_v17, %v1075_v60  ;;  %v963_v0 = vpop.permute.xlu0 %962 }
 0x173   : > { %v967_v7 = vsel %vm966_vm13, %v963_v0, %v965_v30  ;;  %v968_v15 = vsel %vm966_vm13, %v965_v30, %v963_v0 }
 0x174   : > { %v969_v16 = vmul.f32 %v2872_v44, %v968_v15  ;;  %v970_v25 = vmul.f32 %v2877_v45, %v967_v7 }
 0x175   : > { %v1334_v13 = vpop.permute.xlu1 %1333 }
 0x176   : > { %v971_v14 = vadd.f32 %v969_v16, %v944_v35  ;;  %v972_v27 = vadd.f32 %v970_v25, %v945_v29  ;;  %v1332_v31 = vpop.permute.xlu0 %1331 }
 0x177   : > { %v1336_v28 = vsel %vm1335_vm14, %v1332_v31, %v1334_v13  ;;  %v1337_v6 = vsel %vm1335_vm14, %v1334_v13, %v1332_v31 }
 0x178   : > { %v977_v36 = vsel %vm973_vm15, %v971_v14, 0.0  ;;  %v1338_v3 = vmul.f32 %v2872_v44, %v1336_v28  ;;  %v1339_v52 = vmul.f32 %v2877_v45, %v1337_v6 }
 0x179   : > { %v1529_v38 = vpop.permute.xlu1 %1528 }
 0x17a   : > { %v1340_v23 = vadd.f32 %v1338_v3, %v1313_v39  ;;  %v1341_v8 = vadd.f32 %v1339_v52, %v1314_v43  ;;  %v1527_v18 = vpop.permute.xlu0 %1526 }
 0x17b   : > { %v1531_v26 = vsel %vm1530_vm1, %v1527_v18, %v1529_v38  ;;  %v1532_v46 = vsel %vm1530_vm1, %v1529_v38, %v1527_v18 }
 0x17c   : > { %v1349_v35 = vsel %vm1345_vm2, %v1341_v8, 0.0  ;;  %v1350_v29 = vadd.f32 %v1340_v23, %v2911_v22  ;;  %v1533_v5 = vmul.f32 %v2872_v44, %v1531_v26  ;;  %v1534_v48 = vmul.f32 %v2877_v45, %v1532_v46 }
 0x17d   : > { %v1351_v10 = vadd.f32 %v1349_v35, %v2902_v11  ;;  %v1722_v51 = vpop.permute.xlu1 %1721 }
 0x17e   : > { %v1535_v49 = vadd.f32 %v1533_v5, %v1508_v54  ;;  %v1536_v39 = vadd.f32 %v1534_v48, %v1509_v61  ;;  %v1720_v43 = vpop.permute.xlu0 %1719 }
 0x17f   : > { %v1724_v55 = vsel %vm1723_vm3, %v1720_v43, %v1722_v51  ;;  %v1725_v62 = vsel %vm1723_vm3, %v1722_v51, %v1720_v43 }
 0x180   : > { %v1542_v40 = vsel %vm1538_vm4, %v1536_v39, 0.0  ;;  %v1543_v19 = vadd.f32 %v1535_v49, %v3021_v47  ;;  %v1726_v22 = vmul.f32 %v2872_v44, %v1724_v55  ;;  %v1727_v20 = vmul.f32 %v2877_v45, %v1725_v62 }
 0x181   : > { %v1544_v4 = vadd.f32 %v1542_v40, %v3014_v34  ;;  %v1122_v11 = vpop.permute.xlu1 %1121 }
 0x182   : > { %v1738_v32 = vadd.f32 %v1543_v19, %v1350_v29  ;;  %v1728_v54 = vadd.f32 %v1726_v22, %v1701_v56  ;;  %v1729_v61 = vadd.f32 %v1727_v20, %v1702_v58  ;;  %v1120_v2 = vpop.permute.xlu0 %1119 }
 0x183   : > { %v1739_v41 = vadd.f32 %v1544_v4, %v1351_v10  ;;  %v1124_v59 = vsel %vm1123_vm5, %v1120_v2, %v1122_v11  ;;  %v1125_v57 = vsel %vm1123_vm5, %v1122_v11, %v1120_v2 }
 0x184   : > { %v1735_v50 = vsel %vm1731_vm6, %v1729_v61, 0.0  ;;  %v1736_v47 = vadd.f32 %v1728_v54, %v977_v36  ;;  %v1126_v53 = vmul.f32 %v2826_v9, %v1124_v59  ;;  %v1127_v60 = vmul.f32 %v2832_v12, %v1125_v57 }
 0x185   : > { %v1737_v42 = vadd.f32 %v1735_v50, %v972_v27  ;;  %v1149_v34 = vpop.permute.xlu1 %1148 }
 0x186   : > { %v1128_v17 = vadd.f32 %v1126_v53, %v1101_v63  ;;  %v1129_v33 = vadd.f32 %v1127_v60, %v1102_v21  ;;  %v1147_v30 = vpop.permute.xlu0 %1146 }
 0x187   : > { %v1151_v0 = vsel %vm1150_vm7, %v1147_v30, %v1149_v34  ;;  %v1152_v56 = vsel %vm1150_vm7, %v1149_v34, %v1147_v30 }
 0x188   : > { %v1153_v58 = vmul.f32 %v2872_v44, %v1151_v0  ;;  %v1154_v7 = vmul.f32 %v2877_v45, %v1152_v56 }
 0x18a   : > { %v1155_v15 = vadd.f32 %v1153_v58, %v1128_v17  ;;  %v1156_v24 = vadd.f32 %v1154_v7, %v1129_v33 }
 0x18c   : > { %v1740_v16 = vadd.f32 %v1736_v47, %v1155_v15  ;;  %v1741_v25 = vadd.f32 %v1737_v42, %v1156_v24 }
 0x18e   : > { %v1742_v13 = vadd.f32 %v1740_v16, %v1738_v32  ;;  %v1743_v9 = vadd.f32 %v1741_v25, %v1739_v41 }
 0x190   : > { %v1990_v12 = vmul.f32 -1.442695, %v1742_v13  ;;  %v1991_v14 = vmul.f32 -1.442695, %v1743_v9 }
 0x192   : > { %2114 = vpow2.f32 %v1990_v12 }
 0x193   : > { %2116 = vpow2.f32 %v1991_v14 }
 0x19f   : > { %v2115_v63 = vpop.eup %2114 }
 0x1a0   : > { %v2117_v21 = vpop.eup %2116  ;;  %v1750_v27 = vadd.f32 1.0, %v2115_v63 }
 0x1a1   : > { %v1751_v31 = vadd.f32 1.0, %v2117_v21 }
 0x1a2   : > { %2118 = vrcp.f32 %v1750_v27 }
 0x1a3   : > { %2120 = vrcp.f32 %v1751_v31 }
 0x1af   : > { %v2119_v44 = vpop.eup %2118 }
 0x1b0   : > { %v2121_v45 = vpop.eup %2120 }
 0x1b1   : > { %v1758_v28 = vcombine.low %v2119_v44, %v2121_v45 }
 0x1b3   : > { %v1765_v6 = vrot.slane %v1758_v28, %v2420_v37 }
 0x1b5   : > { %v1772_v36 = vrot.slane %v1765_v6, %v2420_v37 }
 0x1b7   : > { %1774 = vst.msk [vmem:[%s153_s3] sm:$0x3] %vm2410_vm0, %v1772_v36 }
 0x1b8   : > { %2172 = shalt.err (!%p2169_p3)
}
 0x1b9   : > { %s2173_s0 = scalar_lea.hbm %s1788_s7, 32  ;;  %s2177_s22 = scalar_lea.hbm %s3220_s2, 64 }
 0x1ba   : > { %p2174_p5 = scmp.ne.s32.totalorder %s1788_s7, %s2173_s0  ;;  %p2178_p10 = scmp.lt.s32.totalorder %s1788_s7, %s3220_s2 }
 0x1bb   : > { %p2179_p4 = scmp.lt.s32.totalorder %s2177_s22, %s2173_s0 }
 0x1bc   : > { %p2175_p6 = pnand %p2174_p5, %p2366_p9 }
 0x1bd   : > { %p2180_p13 = por %p2179_p4, %p2178_p10 }
 0x1be   : > { %p2176_p7 = pneg %p2175_p6 }
 0x1c0   : > { %p2181_p8 = pnand %p2180_p13, %p2176_p7 }
 0x1c2   : > { %2184 = shalt.err (!%p2181_p8)
}
 0x1c3   : > { %2001 = dma.vmem_to_hbm [thread:$0]  (%p2366_p9), %s1791_s4, 32, %s1788_s7, %s1776_s8  }
 0x1c4 PF: > { %s1802_s27 = sand.u32 1, %s2221_s12   ;;  %p3228_p11 = scmp.ne.s32.totalorder %s3224_s26, 0 }
 0x1c5   : > { %p3229_p12 = scmp.ge.s32.totalorder %s2241_s17, 2  ;;  %s1803_s28 = scalar_lea.sflag [#allocation8], %s1802_s27 }
 0x1c7   : > { %p2008_p0 = pnand %p3229_p12, %p3228_p11 }
 0x1c9   : > { %p2009_p1 = pneg %p2008_p0 }
 0x1cb   : > { %2216 = dma.done.wait (%p2009_p1), %s1803_s28, 32  }
 0x1cc   : > { %2218 = vsyncadd (%p2009_p1), %s1803_s28, 4294967264  ;;  %s22_s17 = sadd.s32 1, %s2241_s17   ;;  %s3230_s12 = smov %s2225_s13 }
 0x1cd   : > { %p19_p2 = scmp.ge.s32.totalorder %s22_s17, 4   ;;  %s3231_s13 = smov %s2229_s14 }
 0x1ce   : > { %s3232_s14 = smov %s2371_s25  ;;  %s3233_s15 = smov %s2237_s16 }
 0x1cf   : > { %s3234_s16 = smov %s3236_s19  ;;  %21 = sbr.rel (!%p19_p2) target bundleno = 11 (0xb), region = 77 }
 0x1d4   :  { %1808 = vsyncpa [#allocation7], 1 }
 0x1d5   :  { %1810 = vsyncpa [#allocation7 + $0x1], 1 }
 0x1d6   :  { %1811 = vsyncpa [#allocation8], 1 }
 0x1d7   :  { %1813 = vsyncpa [#allocation8 + $0x1], 1 }

</bundles_post_ra>
